<compile_context>
chip_gen: v6e
topology: v6e:2x2x1
jax: 0.10.0
libtpu: 0.0.40
codegen_flags: <defaults>
</compile_context>

<pallas_src>
import jax
import jax.numpy as jnp
from jax.experimental import pallas as pl
from jax.experimental.pallas import tpu as pltpu


def critic_kernel(xT_ref, w1_ref, b1_ref, w2_ref, b2_ref, w3_ref, b3_ref, o_ref):
    # xT_ref: (state_dim, tile_b) f32 ; weights pre-cast to bf16 in the wrapper.
    xT = xT_ref[...].astype(jnp.bfloat16)

    # Layer 1: (hidden, state_dim) @ (state_dim, tile_b) -> (hidden, tile_b), f32 acc.
    h1 = jnp.dot(w1_ref[...], xT, preferred_element_type=jnp.float32) + b1_ref[...]
    h1 = jnp.maximum(h1, 0.0)

    # Layer 2: (hidden, hidden) @ (hidden, tile_b) -> (hidden, tile_b), f32 acc.
    h2 = jnp.dot(w2_ref[...], h1.astype(jnp.bfloat16),
                 preferred_element_type=jnp.float32) + b2_ref[...]
    h2 = jnp.maximum(h2, 0.0)

    # Layer 3 (hidden -> 1): VPU multiply + XLU sublane reduce; lane-dense output row.
    out = jnp.sum(h2 * w3_ref[...], axis=0, keepdims=True) + b3_ref[...]  # (1, tile_b)
    o_ref[...] = out.astype(o_ref.dtype)


def critic_forward(x, params, *, tile_b=None):
    """x: (B, state_dim) float32 -> (B, 1) float32."""
    w1, b1, w2, b2, w3, b3 = params
    B, state_dim = x.shape
    hidden = w1.shape[0]

    # ---- batch tile: lane-aligned (multiple of 128) unless it spans the full batch.
    req = tile_b if tile_b is not None else min(4096, pl.cdiv(B, 2))
    if req >= B:
        tile_b = B                                  # single full-extent block
    else:
        tile_b = max(128, (req // 128) * 128)       # must be a lane multiple when tiled
        if tile_b >= B:
            tile_b = B
    grid = (pl.cdiv(B, tile_b),)

    # ---- cast MXU-feeding weights to bf16 once (bf16-native MXU on v5e/v6e/v7x).
    w1_bf = w1.astype(jnp.bfloat16)
    w2_bf = w2.astype(jnp.bfloat16)

    # Feature-major input: batch on lanes. (Cheap XLA transpose outside the kernel;
    # upstream code could also keep x stored transposed.)
    xT = x.T                                        # (state_dim, B)

    # Weights / biases: same full block every grid step -> resident in VMEM.
    def resident(a):
        return pl.BlockSpec(a.shape, lambda i: (0,) * a.ndim)

    # ---- VMEM budget as a function of tile_b (clamped to be safe on v7x).
    per_step_bytes = (
        2 * state_dim * tile_b * 4      # double-buffered x^T tiles (f32)
        + 2 * tile_b * 4                # double-buffered output rows
        + 2 * hidden * tile_b * 4       # h1 + h2 intermediates (f32)
        + 2 * (w1_bf.size * 2 + w2_bf.size * 2)          # resident weights (x2 buffers)
        + 2 * 4 * (b1.size + b2.size + w3.size + b3.size)
    )
    vmem_limit = int(min(32 * 1024 * 1024, max(8 * 1024 * 1024, 4 * per_step_bytes)))

    # ---- advisory cost estimate so XLA schedules neighbors around this call.
    flops = 2 * B * (state_dim * hidden + hidden * hidden + hidden)
    bytes_accessed = (x.size * 4 + w1_bf.size * 2 + w2_bf.size * 2
                      + 4 * (b1.size + b2.size + w3.size + b3.size) + B * 4)
    cost = pl.CostEstimate(flops=flops, transcendentals=0,
                           bytes_accessed=bytes_accessed)

    out_row = pl.pallas_call(
        critic_kernel,
        out_shape=jax.ShapeDtypeStruct((1, B), jnp.float32),
        grid=grid,
        in_specs=[
            pl.BlockSpec((state_dim, tile_b), lambda i: (0, i)),   # x^T: batch-tiled on lanes
            resident(w1_bf), resident(b1),
            resident(w2_bf), resident(b2),
            resident(w3), resident(b3),
        ],
        out_specs=pl.BlockSpec((1, tile_b), lambda i: (0, i)),      # lane-dense output row
        compiler_params=pltpu.CompilerParams(
            dimension_semantics=("parallel",),   # grid >= 2 -> both v7x TCs busy
            vmem_limit_bytes=vmem_limit,
        ),
        cost_estimate=cost,
    )(xT, w1_bf, b1, w2_bf, b2, w3, b3)

    return out_row.reshape(B, 1)


def init_params(key, state_dim, hidden_dim):
    """Deterministic init mimicking nn.Linear's uniform(-1/sqrt(fan_in), +).

    Weights kept in nn.Linear's (out_features, in_features) layout (feature-major
    kernel); biases stored as column vectors so they broadcast over batch lanes.
    """
    ks = jax.random.split(key, 6)

    def lin(kw, kb, fan_in, fan_out):
        bound = 1.0 / jnp.sqrt(fan_in)
        w = jax.random.uniform(kw, (fan_out, fan_in), jnp.float32, -bound, bound)
        b = jax.random.uniform(kb, (fan_out, 1), jnp.float32, -bound, bound)
        return w, b

    w1, b1 = lin(ks[0], ks[1], state_dim, hidden_dim)
    w2, b2 = lin(ks[2], ks[3], hidden_dim, hidden_dim)
    w3, b3 = lin(ks[4], ks[5], hidden_dim, 1)
    # Final-layer weight stored as a (hidden, 1) column for the VPU/XLU reduce path.
    return (w1, b1, w2, b2, w3.T, b3.reshape(1, 1))


if __name__ == "__main__":
    key = jax.random.PRNGKey(0)
    k_x, k_p = jax.random.split(key)

    # hidden_dim=256 is the module's default; batch big enough to exercise a
    # 2-step batch grid (tile_b = 512 rows per step).
    batch, state_dim, hidden_dim = 1024, 16, 256
    x = jax.random.normal(k_x, (batch, state_dim), jnp.float32)
    params = init_params(k_p, state_dim, hidden_dim)

    out = jax.block_until_ready(critic_forward(x, params))
    assert out.shape == (batch, 1)

    w1, b1, w2, b2, w3, b3 = params

    # Tight check against a reference that mirrors the kernel's dtype strategy
    # (bf16 matmul inputs, f32 accumulation, f32 elementwise, feature-major).
    h1 = jnp.maximum(
        jnp.dot(w1.astype(jnp.bfloat16), x.T.astype(jnp.bfloat16),
                preferred_element_type=jnp.float32) + b1, 0.0)
    h2 = jnp.maximum(
        jnp.dot(w2.astype(jnp.bfloat16), h1.astype(jnp.bfloat16),
                preferred_element_type=jnp.float32) + b2, 0.0)
    ref_bf16 = (jnp.sum(h2 * w3, axis=0, keepdims=True) + b3).T
    assert jnp.allclose(out, ref_bf16, atol=1e-3, rtol=1e-3)

    # Looser check against the pure-f32 module semantics (bf16 input rounding
    # keeps the error well inside this tolerance).
    ref_f32 = jnp.maximum(x @ w1.T + b1.T, 0.0)
    ref_f32 = jnp.maximum(ref_f32 @ w2.T + b2.T, 0.0)
    ref_f32 = ref_f32 @ w3 + b3
    assert jnp.allclose(out, ref_f32, atol=5e-2, rtol=5e-2)

    print("KERNEL_OK")
</pallas_src>

<mosaic_0001>
module attributes {stable_mosaic.version = 11 : i64} {
  func.func @critic_kernel(%arg0: i32, %arg1: memref<16x512xf32, #tpu.memory_space<vmem>>, %arg2: memref<256x16xbf16, #tpu.memory_space<vmem>>, %arg3: memref<256x1xf32, #tpu.memory_space<vmem>>, %arg4: memref<256x256xbf16, #tpu.memory_space<vmem>>, %arg5: memref<256x1xf32, #tpu.memory_space<vmem>>, %arg6: memref<256x1xf32, #tpu.memory_space<vmem>>, %arg7: memref<1x1xf32, #tpu.memory_space<vmem>>, %arg8: memref<1x512xf32, #tpu.memory_space<vmem>>) attributes {dimension_semantics = [#tpu.dimension_semantics<parallel>], iteration_bounds = array<i64: 2>, scalar_prefetch = 0 : i64, scratch_operands = 0 : i64, tpu.core_type = #tpu.core_type<tc>, window_params = [{transform_indices = @transform_0, window_bounds = array<i64: 16, 512>}, {pipeline_mode = #tpu.pipeline_mode<synchronous>, transform_indices = @transform_1, window_bounds = array<i64: 256, 16>}, {pipeline_mode = #tpu.pipeline_mode<synchronous>, transform_indices = @transform_2, window_bounds = array<i64: 256, 1>}, {pipeline_mode = #tpu.pipeline_mode<synchronous>, transform_indices = @transform_3, window_bounds = array<i64: 256, 256>}, {pipeline_mode = #tpu.pipeline_mode<synchronous>, transform_indices = @transform_4, window_bounds = array<i64: 256, 1>}, {pipeline_mode = #tpu.pipeline_mode<synchronous>, transform_indices = @transform_5, window_bounds = array<i64: 256, 1>}, {pipeline_mode = #tpu.pipeline_mode<synchronous>, transform_indices = @transform_6, window_bounds = array<i64: 1, 1>}, {transform_indices = @transform_7, window_bounds = array<i64: 1, 512>}]} {
    %c0 = arith.constant 0 : index
    %c0_0 = arith.constant 0 : index
    %0 = vector.load %arg1[%c0, %c0_0] : memref<16x512xf32, #tpu.memory_space<vmem>>, vector<16x512xf32>
    %1 = arith.truncf %0 : vector<16x512xf32> to vector<16x512xbf16>
    %c0_1 = arith.constant 0 : index
    %c0_2 = arith.constant 0 : index
    %2 = vector.load %arg2[%c0_1, %c0_2] : memref<256x16xbf16, #tpu.memory_space<vmem>>, vector<256x16xbf16>
    %cst = arith.constant dense<0.000000e+00> : vector<256x512xf32>
    %3 = tpu.matmul %2, %1, %cst {dimension_numbers = #tpu.dot_dimension_numbers<[1], [0], [0], [1], [0, 0, 1, 1], [], []>} : vector<256x16xbf16>, vector<16x512xbf16>, vector<256x512xf32> -> vector<256x512xf32>
    %c0_3 = arith.constant 0 : index
    %c0_4 = arith.constant 0 : index
    %4 = vector.load %arg3[%c0_3, %c0_4] : memref<256x1xf32, #tpu.memory_space<vmem>>, vector<256x1xf32>
    %5 = vector.broadcast %4 : vector<256x1xf32> to vector<256x512xf32>
    %6 = arith.addf %3, %5 : vector<256x512xf32>
    %cst_5 = arith.constant 0.000000e+00 : f32
    %7 = vector.broadcast %cst_5 : f32 to vector<256x512xf32>
    %8 = arith.maximumf %6, %7 : vector<256x512xf32>
    %c0_6 = arith.constant 0 : index
    %c0_7 = arith.constant 0 : index
    %9 = vector.load %arg4[%c0_6, %c0_7] : memref<256x256xbf16, #tpu.memory_space<vmem>>, vector<256x256xbf16>
    %10 = arith.truncf %8 : vector<256x512xf32> to vector<256x512xbf16>
    %cst_8 = arith.constant dense<0.000000e+00> : vector<256x512xf32>
    %11 = tpu.matmul %9, %10, %cst_8 {dimension_numbers = #tpu.dot_dimension_numbers<[1], [0], [0], [1], [0, 0, 1, 1], [], []>} : vector<256x256xbf16>, vector<256x512xbf16>, vector<256x512xf32> -> vector<256x512xf32>
    %c0_9 = arith.constant 0 : index
    %c0_10 = arith.constant 0 : index
    %12 = vector.load %arg5[%c0_9, %c0_10] : memref<256x1xf32, #tpu.memory_space<vmem>>, vector<256x1xf32>
    %13 = vector.broadcast %12 : vector<256x1xf32> to vector<256x512xf32>
    %14 = arith.addf %11, %13 : vector<256x512xf32>
    %cst_11 = arith.constant 0.000000e+00 : f32
    %15 = vector.broadcast %cst_11 : f32 to vector<256x512xf32>
    %16 = arith.maximumf %14, %15 : vector<256x512xf32>
    %c0_12 = arith.constant 0 : index
    %c0_13 = arith.constant 0 : index
    %17 = vector.load %arg6[%c0_12, %c0_13] : memref<256x1xf32, #tpu.memory_space<vmem>>, vector<256x1xf32>
    %18 = vector.broadcast %17 : vector<256x1xf32> to vector<256x512xf32>
    %19 = arith.mulf %16, %18 : vector<256x512xf32>
    %cst_14 = arith.constant dense<0.000000e+00> : vector<512xf32>
    %20 = vector.multi_reduction <add>, %19, %cst_14 [0] : vector<256x512xf32> to vector<512xf32>
    %21 = vector.shape_cast %20 : vector<512xf32> to vector<1x512xf32>
    %c0_15 = arith.constant 0 : index
    %c0_16 = arith.constant 0 : index
    %22 = vector.load %arg7[%c0_15, %c0_16] : memref<1x1xf32, #tpu.memory_space<vmem>>, vector<1x1xf32>
    %23 = vector.broadcast %22 : vector<1x1xf32> to vector<1x512xf32>
    %24 = arith.addf %21, %23 : vector<1x512xf32>
    %c0_17 = arith.constant 0 : index
    %c0_18 = arith.constant 0 : index
    %25 = vector.load %arg8[%c0_17, %c0_18] : memref<1x512xf32, #tpu.memory_space<vmem>>, vector<1x512xf32>
    tpu.vector_store %arg8[%c0_17, %c0_18], %24 {strides = array<i32>} : memref<1x512xf32, #tpu.memory_space<vmem>>, vector<1x512xf32>,
    return
  }
  func.func @transform_0(%arg0: i32) -> (i32, i32) {
    %c0_i32 = arith.constant 0 : i32
    %c0_i32_0 = arith.constant 0 : i32
    return %c0_i32, %arg0 : i32, i32
  }
  func.func @transform_1(%arg0: i32) -> (i32, i32) {
    %c0_i32 = arith.constant 0 : i32
    %c0_i32_0 = arith.constant 0 : i32
    %c0_i32_1 = arith.constant 0 : i32
    return %c0_i32, %c0_i32_0 : i32, i32
  }
  func.func @transform_2(%arg0: i32) -> (i32, i32) {
    %c0_i32 = arith.constant 0 : i32
    %c0_i32_0 = arith.constant 0 : i32
    %c0_i32_1 = arith.constant 0 : i32
    return %c0_i32, %c0_i32_0 : i32, i32
  }
  func.func @transform_3(%arg0: i32) -> (i32, i32) {
    %c0_i32 = arith.constant 0 : i32
    %c0_i32_0 = arith.constant 0 : i32
    %c0_i32_1 = arith.constant 0 : i32
    return %c0_i32, %c0_i32_0 : i32, i32
  }
  func.func @transform_4(%arg0: i32) -> (i32, i32) {
    %c0_i32 = arith.constant 0 : i32
    %c0_i32_0 = arith.constant 0 : i32
    %c0_i32_1 = arith.constant 0 : i32
    return %c0_i32, %c0_i32_0 : i32, i32
  }
  func.func @transform_5(%arg0: i32) -> (i32, i32) {
    %c0_i32 = arith.constant 0 : i32
    %c0_i32_0 = arith.constant 0 : i32
    %c0_i32_1 = arith.constant 0 : i32
    return %c0_i32, %c0_i32_0 : i32, i32
  }
  func.func @transform_6(%arg0: i32) -> (i32, i32) {
    %c0_i32 = arith.constant 0 : i32
    %c0_i32_0 = arith.constant 0 : i32
    %c0_i32_1 = arith.constant 0 : i32
    return %c0_i32, %c0_i32_0 : i32, i32
  }
  func.func @transform_7(%arg0: i32) -> (i32, i32) {
    %c0_i32 = arith.constant 0 : i32
    %c0_i32_0 = arith.constant 0 : i32
    return %c0_i32, %arg0 : i32, i32
  }
}

</mosaic_0001>

<bundles_post_ra>
// kernel: tpu_custom_call.1
= control target key start
LH: loop header
LB: loop body
LE: loop exit
PB: predicated region body
PF: predicated region fallthrough
CT: control target
= control target key end

     0   :  { %s4335_s0 = inlined_call_operand.vmem [shape: f32[16,1024], index: 0, kind: input, shape index: {}]   ;;  %s4336_s1 = inlined_call_operand.vmem [shape: bf16[256,16], index: 1, kind: input, shape index: {}]   ;;  %s4337_s2 = inlined_call_operand.vmem [shape: f32[256,1], index: 2, kind: input, shape index: {}]   ;;  %s4338_s3 = inlined_call_operand.vmem [shape: bf16[256,256], index: 3, kind: input, shape index: {}]   ;;  %s4339_s4 = inlined_call_operand.vmem [shape: f32[256,1], index: 4, kind: input, shape index: {}]   ;;  %s4340_s5 = inlined_call_operand.vmem [shape: f32[256,1], index: 5, kind: input, shape index: {}]   ;;  %s4341_s6 = inlined_call_operand.<no memory space> [shape: f32[1,1], index: 6, kind: input, shape index: {}]   ;;  %s4342_s7 = inlined_call_operand.hbm [shape: f32[1,1024], index: 7, kind: output, shape index: {}]  }
   0x1   :  { %v12_v0 = vstv %s4341_s6 }
   0x2   :  { %13 = vst [vmem:[#allocation2] sm:$0x1] %v12_v0 }
   0x3   :  { %14 = vsyncpa [#allocation5], 0 }
   0x4   :  { %16 = vsyncpa [#allocation5 + $0x1], 0  ;;  %s3064_s26 = smov 0   ;;  %s3066_s27 = smov 0  }
   0x5   :  { %s3068_s28 = smov 0   ;;  %s3070_s29 = smov 0  }
   0x6 LB: > { %s2752_s6 = sadd.s32 4294967295, %s3016_s29   ;;  %s2753_s30 = sadd.s32 4294967294, %s3016_s29   ;;  %s3016_s29 = sphi %s3070_s29, %s4489_s29   ;;  %s3012_s28 = sphi %s3068_s28, %s4488_s28   ;;  %s3008_s27 = sphi %s3066_s27, %s4487_s27   ;;  %s3004_s26 = sphi %s3064_s26, %s4486_s26  }
   0x7   : > { %s3087_s8 = sadd.s32 1, %s3016_s29   ;;  %s29_s9 = sadd.s32 1, %s3012_s28 }
   0x8   : > { %s26_s10 = ssub.s32 %s3016_s29, %s3087_s8  ;;  %p36_p0 = scmp.ne.s32.totalorder %s3012_s28, %s3008_s27 }
   0x9   : > { %p27_p1 = scmp.eq.s32.totalorder %s26_s10, 0  ;;  %p37_p2 = scmp.eq.s32.totalorder %s3016_s29, 0 }
   0xa   : > { %p192_p3 = scmp.eq.s32.totalorder %s2752_s6, 1  ;;  %p197_p4 = scmp.ne.s32.totalorder %s3008_s27, %s3004_s26 }
   0xb   : > { %s3100_s11 = scalar_select %p27_p1, %s3012_s28, %s29_s9  }
   0xc   : > { %p38_p5 = por %p37_p2, %p36_p0  ;;  %p3102_p6 = por %p192_p3, %p36_p0 }
   0xd   : > { %p198_p7 = scmp.eq.s32.totalorder %s2753_s30, 1  ;;  %p4363_p9 = scmp.ge.s32.totalorder %s3016_s29, 2 }
   0xf   : > { %p3106_p8 = por %p198_p7, %p197_p4  ;;  %232 = sbr.rel (%p4363_p9) target bundleno = 28 (0x1c), region = 40 }
  0x14   : > { %235 = sbr.rel (!%p38_p5) target bundleno = 28 (0x1c), region = 44  ;;  %s237_s14 = sand.u32 (%p38_p5), 1, %s3012_s28  }
  0x15   : > { %s2847_s15 = sshll.u32 (%p38_p5), %s3016_s29, 5  ;;  %s2756_s16 = sshll.u32 (%p38_p5), %s237_s14, 6 }
  0x16   : > { %s242_s19 = scalar_lea.vmem (%p38_p5), %s4335_s0, %s2847_s15  ;;  %s239_s20 = scalar_lea.vmem (%p38_p5), [#allocation3], %s2756_s16 }
  0x17   : > { %v255_v1 = vld [vmem:[%s242_s19] sm:$0xff] (%p38_p5)  ;;  %v257_v2 = vld [vmem:[%s242_s19 + $0x8] sm:$0xff] (%p38_p5)  ;;  %v259_v3 = vld [vmem:[%s242_s19 + $0x10] sm:$0xff] (%p38_p5) }
  0x18   : > { %256 = vst [vmem:[%s239_s20] sm:$0xff] (%p38_p5), %v255_v1  ;;  %258 = vst [vmem:[%s239_s20 + $0x8] sm:$0xff] (%p38_p5), %v257_v2  ;;  %v261_v4 = vld [vmem:[%s242_s19 + $0x18] sm:$0xff] (%p38_p5)  ;;  %v263_v5 = vld [vmem:[%s242_s19 + $0x40] sm:$0xff] (%p38_p5) }
  0x19   : > { %260 = vst [vmem:[%s239_s20 + $0x10] sm:$0xff] %v259_v3  ;;  %v265_v6 = vld [vmem:[%s242_s19 + $0x48] sm:$0xff]  ;;  %262 = vst [vmem:[%s239_s20 + $0x18] sm:$0xff] %v261_v4  ;;  %v267_v7 = vld [vmem:[%s242_s19 + $0x50] sm:$0xff] }
  0x1a   : > { %264 = vst [vmem:[%s239_s20 + $0x20] sm:$0xff] %v263_v5  ;;  %266 = vst [vmem:[%s239_s20 + $0x28] sm:$0xff] %v265_v6  ;;  %v269_v8 = vld [vmem:[%s242_s19 + $0x58] sm:$0xff] }
  0x1b   : > { %268 = vst [vmem:[%s239_s20 + $0x30] sm:$0xff] %v267_v7  ;;  %270 = vst [vmem:[%s239_s20 + $0x38] sm:$0xff] %v269_v8 }
  0x1c PF: > { %p2759_p10 = scmp.ge.s32.totalorder %s3016_s29, 1  ;;  %p275_p11 = scmp.lt.s32.totalorder %s3016_s29, 3 }
  0x1e   : > { %p276_p12 = pnand %p2759_p10, %p275_p11 }
  0x20   : > { %279 = sbr.rel (%p276_p12) target bundleno = 768 (0x300), region = 67 }
  0x25   : > { %v374_v9 = vld [vmem:[%s4337_s2 + $0x70] sm:$0xff]  ;;  %v372_v10 = vld [vmem:[%s4337_s2 + $0x60] sm:$0xff]  ;;  %s3127_s25 = sand.u32 1, %s3008_s27   ;;  %v3018_v11 = vmov 0   ;;  %v375_v12 = vld [vmem:[%s4337_s2 + $0x78] sm:$0xff]  ;;  %vm632_vm0 = vcmask 130048  }
  0x26   : > { %2891 = vset.pattern.permute.xlu1 %v3018_v11  ;;  %2890 = vset.pattern.permute.xlu0 %v3018_v11  ;;  %s2760_s10 = sshll.u32 %s3127_s25, 6  ;;  %v373_v13 = vld [vmem:[%s4337_s2 + $0x68] sm:$0xff]  ;;  %v371_v26 = vld [vmem:[%s4337_s2 + $0x58] sm:$0xff]  ;;  %v370_v27 = vld [vmem:[%s4337_s2 + $0x50] sm:$0xff]  ;;  %s2761_s17 = sshll.u32 %s3127_s25, 2 }
  0x27   : > { %464 = vperm.xlu0 %2890, %v374_v9   ;;  %454 = vperm.xlu1 %2891, %v372_v10   ;;  %s284_s16 = scalar_lea.vmem [#allocation3], %s2760_s10  ;;  %v2892_v28 = vld [vmem:[%s4336_s1] sm:$0xff]   ;;  %v369_v29 = vld [vmem:[%s4337_s2 + $0x48] sm:$0xff]  ;;  %v367_v31 = vld [vmem:[%s4337_s2 + $0x38] sm:$0xff]  ;;  %s2848_s18 = sshll.u32 %s2752_s6, 6 }
  0x28   : > { %v317_v14 = vld [vmem:[%s284_s16 + $0x8] sm:$0xff]  ;;  %v319_v16 = vld [vmem:[%s284_s16 + $0x18] sm:$0xff]  ;;  %713 = vmatprep.mubr.bf16.mxu0 %v3018_v11  ;;  %906 = vmatprep.mubr.bf16.mxu1 %v3018_v11  ;;  %v316_v19 = vld [vmem:[%s284_s16] sm:$0xff]  ;;  %s312_s19 = scalar_lea.vmem [#allocation4], %s2761_s17  ;;  %s2686_s23 = scalar_lea.hbm %s4342_s7, %s2848_s18 }
  0x29   : > { %v321_v15 = vld [vmem:[%s284_s16 + $0x28] sm:$0xff]  ;;  %v323_v18 = vld [vmem:[%s284_s16 + $0x38] sm:$0xff]  ;;  %v320_v20 = vld [vmem:[%s284_s16 + $0x20] sm:$0xff]  ;;  %s2688_s20 = sshll.u32 %s312_s19, 4  ;;  %s2674_s24 = scalar_lea.sflag [#allocation5], %s3127_s25  ;;  %s2689_s20 = int_to_ptr.vmem [resolvable:$true] %s2688_s20 }
  0x2a   : > { %v325_v17 = vpack.c.bf16 %v321_v15, %v317_v14  ;;  %v327_v21 = vpack.c.bf16 %v323_v18, %v319_v16  ;;  %v324_v22 = vpack.c.bf16 %v320_v20, %v316_v19  ;;  %v318_v23 = vld [vmem:[%s284_s16 + $0x10] sm:$0xff]  ;;  %v368_v30 = vld [vmem:[%s4337_s2 + $0x40] sm:$0xff]  ;;  %v2893_v33 = vld [vmem:[%s4336_s1 + $0x8] sm:$0xff]   ;;  %s2956_s30 = scalar_lea.vmem %s2689_s20, 64  ;;  %s3020_s9 = smov [#allocation4]  }
  0x2b   : > { %v322_v24 = vld [vmem:[%s284_s16 + $0x30] sm:$0xff]  ;;  %469 = vperm.xlu0 %2890, %v375_v12   ;;  %459 = vperm.xlu1 %2891, %v373_v13   ;;  %v365_v34 = vld [vmem:[%s4337_s2 + $0x28] sm:$0xff]  ;;  %v364_v35 = vld [vmem:[%s4337_s2 + $0x20] sm:$0xff]  ;;  %p2957_p13 = scmp.ne.s32.totalorder %s2689_s20, %s2956_s30  ;;  %s2960_s10 = sshll.u32 %s3020_s9, 4  ;;  %s2961_s10 = int_to_ptr.vmem [resolvable:$false] %s2960_s10 }
  0x2c   : > { %v326_v25 = vpack.c.bf16 %v322_v24, %v318_v23  ;;  %695 = vmatprep.subr.bf16.mxu0 %v325_v17  ;;  %888 = vmatprep.subr.bf16.mxu1 %v327_v21  ;;  %v366_v32 = vld [vmem:[%s4337_s2 + $0x30] sm:$0xff]  ;;  %v363_v36 = vld [vmem:[%s4337_s2 + $0x18] sm:$0xff]  ;;  %v361_v39 = vld [vmem:[%s4337_s2 + $0x8] sm:$0xff]  ;;  %s2962_s6 = scalar_lea.vmem %s2961_s10, 128  ;;  %p2963_p2 = scmp.lt.s32.totalorder %s2689_s20, %s2961_s10 }
  0x2d   : > { %696 = vmatpush1.bf16.msra.mxu0 %v324_v22  ;;  %v362_v37 = vld [vmem:[%s4337_s2 + $0x10] sm:$0xff]  ;;  %v360_v40 = vld [vmem:[%s4337_s2] sm:$0xff]  ;;  %v391_v41 = vld [vmem:[%s4337_s2 + $0xf8] sm:$0xff]  ;;  %p2958_p0 = pnand %p2957_p13, %p3102_p6  ;;  %p2964_p3 = scmp.lt.s32.totalorder %s2962_s6, %s2956_s30 }
  0x2e   : > { %889 = vmatpush1.bf16.msra.mxu1 %v326_v25  ;;  %v2894_v38 = vld [vmem:[%s4336_s1 + $0x10] sm:$0xff]   ;;  %v2895_v43 = vld [vmem:[%s4336_s1 + $0x18] sm:$0xff]   ;;  %v389_v44 = vld [vmem:[%s4337_s2 + $0xe8] sm:$0xff] }
  0x2f   : > { %449 = vperm.xlu1 %2891, %v371_v26   ;;  %444 = vperm.xlu0 %2890, %v370_v27   ;;  %v390_v42 = vld [vmem:[%s4337_s2 + $0xf0] sm:$0xff]  ;;  %v388_v45 = vld [vmem:[%s4337_s2 + $0xe0] sm:$0xff]  ;;  %v387_v46 = vld [vmem:[%s4337_s2 + $0xd8] sm:$0xff]  ;;  %p2959_p1 = pneg %p2958_p0  ;;  %p2965_p4 = por %p2964_p3, %p2963_p2 }
  0x30   : > { %2778 = vmatmul.mubr.msk.bf16.vlgmr.msra.gmra.mxu0 %vm632_vm0, %v2892_v28  ;;  %v386_v47 = vld [vmem:[%s4337_s2 + $0xd0] sm:$0xff]  ;;  %v2896_v48 = vld [vmem:[%s4336_s1 + $0x20] sm:$0xff]   ;;  %v385_v49 = vld [vmem:[%s4337_s2 + $0xc8] sm:$0xff] }
  0x31   : > { %2794 = vmatmul.mubr.msk.bf16.vlgmr.msra.gmra.mxu1 %vm632_vm0, %v2892_v28  ;;  %723 = vmatprep.mubr.bf16.mxu0 %v3018_v11  ;;  %v384_v50 = vld [vmem:[%s4337_s2 + $0xc0] sm:$0xff]  ;;  %v383_v51 = vld [vmem:[%s4337_s2 + $0xb8] sm:$0xff]  ;;  %v382_v52 = vld [vmem:[%s4337_s2 + $0xb0] sm:$0xff]  ;;  %p2966_p5 = pnand %p2965_p4, %p2959_p1 }
  0x32   : > { %916 = vmatprep.mubr.bf16.mxu1 %v3018_v11  ;;  %v2897_v53 = vld [vmem:[%s4336_s1 + $0x28] sm:$0xff]   ;;  %v380_v55 = vld [vmem:[%s4337_s2 + $0xa0] sm:$0xff]  ;;  %v379_v56 = vld [vmem:[%s4337_s2 + $0x98] sm:$0xff] }
  0x33   : > { %439 = vperm.xlu1 %2891, %v369_v29   ;;  %434 = vperm.xlu0 %2890, %v368_v30   ;;  %v381_v54 = vld [vmem:[%s4337_s2 + $0xa8] sm:$0xff]  ;;  %v378_v57 = vld [vmem:[%s4337_s2 + $0x90] sm:$0xff]  ;;  %v376_v60 = vld [vmem:[%s4337_s2 + $0x80] sm:$0xff] }
  0x34   : > { %v2898_v58 = vld [vmem:[%s4336_s1 + $0x30] sm:$0xff]   ;;  %v377_v59 = vld [vmem:[%s4337_s2 + $0x88] sm:$0xff]  ;;  %v1291_v62 = vld [vmem:[%s4339_s4] sm:$0xff] }
  0x35   : > { %v1292_v61 = vld [vmem:[%s4339_s4 + $0x8] sm:$0xff]  ;;  %v2899_v63 = vld [vmem:[%s4336_s1 + $0x38] sm:$0xff]   ;;  %v1293_v1 = vld [vmem:[%s4339_s4 + $0x10] sm:$0xff] }
  0x36   : > { %v1294_v0 = vld [vmem:[%s4339_s4 + $0x18] sm:$0xff]  ;;  %v1296_v2 = vld [vmem:[%s4339_s4 + $0x28] sm:$0xff]  ;;  %v1295_v3 = vld [vmem:[%s4339_s4 + $0x20] sm:$0xff] }
  0x37   : > { %429 = vperm.xlu1 %2891, %v367_v31   ;;  %424 = vperm.xlu0 %2890, %v366_v32   ;;  %v2900_v4 = vld [vmem:[%s4336_s1 + $0x40] sm:$0xff]   ;;  %v1298_v5 = vld [vmem:[%s4339_s4 + $0x38] sm:$0xff]  ;;  %v1297_v6 = vld [vmem:[%s4339_s4 + $0x30] sm:$0xff] }
  0x38   : > { %2779 = vmatmul.mubr.msk.bf16.gmra.mxu0 %vm632_vm0, %v2893_v33  ;;  %v1300_v7 = vld [vmem:[%s4339_s4 + $0x48] sm:$0xff]  ;;  %v1299_v8 = vld [vmem:[%s4339_s4 + $0x40] sm:$0xff]  ;;  %v1302_v10 = vld [vmem:[%s4339_s4 + $0x58] sm:$0xff] }
  0x39   : > { %2795 = vmatmul.mubr.msk.bf16.gmra.mxu1 %vm632_vm0, %v2893_v33  ;;  %733 = vmatprep.mubr.bf16.mxu0 %v3018_v11  ;;  %v2901_v9 = vld [vmem:[%s4336_s1 + $0x48] sm:$0xff]   ;;  %v1301_v12 = vld [vmem:[%s4339_s4 + $0x50] sm:$0xff]  ;;  %v1303_v14 = vld [vmem:[%s4339_s4 + $0x60] sm:$0xff] }
  0x3a   : > { %926 = vmatprep.mubr.bf16.mxu1 %v3018_v11  ;;  %v1304_v13 = vld [vmem:[%s4339_s4 + $0x68] sm:$0xff]  ;;  %v2902_v15 = vld [vmem:[%s4336_s1 + $0x50] sm:$0xff]   ;;  %v1306_v16 = vld [vmem:[%s4339_s4 + $0x78] sm:$0xff] }
  0x3b   : > { %419 = vperm.xlu1 %2891, %v365_v34   ;;  %414 = vperm.xlu0 %2890, %v364_v35   ;;  %v1305_v17 = vld [vmem:[%s4339_s4 + $0x70] sm:$0xff]  ;;  %v1308_v18 = vld [vmem:[%s4339_s4 + $0x88] sm:$0xff]  ;;  %v1307_v19 = vld [vmem:[%s4339_s4 + $0x80] sm:$0xff] }
  0x3c   : > { %v2903_v20 = vld [vmem:[%s4336_s1 + $0x58] sm:$0xff]   ;;  %v1309_v22 = vld [vmem:[%s4339_s4 + $0x90] sm:$0xff]  ;;  %v1312_v23 = vld [vmem:[%s4339_s4 + $0xa8] sm:$0xff] }
  0x3d   : > { %v1310_v21 = vld [vmem:[%s4339_s4 + $0x98] sm:$0xff]  ;;  %v1311_v24 = vld [vmem:[%s4339_s4 + $0xa0] sm:$0xff]  ;;  %v1313_v27 = vld [vmem:[%s4339_s4 + $0xb0] sm:$0xff] }
  0x3e   : > { %v2904_v25 = vld [vmem:[%s4336_s1 + $0x60] sm:$0xff]   ;;  %v1314_v26 = vld [vmem:[%s4339_s4 + $0xb8] sm:$0xff]  ;;  %v1316_v28 = vld [vmem:[%s4339_s4 + $0xc8] sm:$0xff] }
  0x3f   : > { %409 = vperm.xlu1 %2891, %v363_v36   ;;  %404 = vperm.xlu0 %2890, %v362_v37   ;;  %v1315_v29 = vld [vmem:[%s4339_s4 + $0xc0] sm:$0xff]  ;;  %v2905_v30 = vld [vmem:[%s4336_s1 + $0x68] sm:$0xff]   ;;  %v1318_v31 = vld [vmem:[%s4339_s4 + $0xd8] sm:$0xff] }
  0x40   : > { %2780 = vmatmul.mubr.msk.bf16.gmra.mxu0 %vm632_vm0, %v2894_v38  ;;  %v1317_v32 = vld [vmem:[%s4339_s4 + $0xd0] sm:$0xff]  ;;  %v2158_v33 = vld [vmem:[%s4340_s5 + $0x8] sm:$0xff]  ;;  %v2157_v34 = vld [vmem:[%s4340_s5] sm:$0xff] }
  0x41   : > { %2796 = vmatmul.mubr.msk.bf16.gmra.mxu1 %vm632_vm0, %v2894_v38  ;;  %743 = vmatprep.mubr.bf16.mxu0 %v3018_v11  ;;  %v2906_v35 = vld [vmem:[%s4336_s1 + $0x70] sm:$0xff]   ;;  %v2160_v36 = vld [vmem:[%s4340_s5 + $0x18] sm:$0xff]  ;;  %v2162_v38 = vld [vmem:[%s4340_s5 + $0x28] sm:$0xff] }
  0x42   : > { %936 = vmatprep.mubr.bf16.mxu1 %v3018_v11  ;;  %v2159_v37 = vld [vmem:[%s4340_s5 + $0x10] sm:$0xff] }
  0x43   : > { %399 = vperm.xlu1 %2891, %v361_v39   ;;  %394 = vperm.xlu0 %2890, %v360_v40   ;;  %v2161_v39 = vld [vmem:[%s4340_s5 + $0x20] sm:$0xff]  ;;  %v2907_v40 = vld [vmem:[%s4336_s1 + $0x78] sm:$0xff]  }
  0x47   : > { %549 = vperm.xlu1 %2891, %v391_v41   ;;  %544 = vperm.xlu0 %2890, %v390_v42   ;;  %v2163_v41 = vld [vmem:[%s4340_s5 + $0x30] sm:$0xff]  ;;  %v2166_v42 = vld [vmem:[%s4340_s5 + $0x48] sm:$0xff] }
  0x48   : > { %2781 = vmatmul.mubr.msk.bf16.gmra.mxu0 %vm632_vm0, %v2895_v43 }
  0x49   : > { %2797 = vmatmul.mubr.msk.bf16.gmra.mxu1 %vm632_vm0, %v2895_v43  ;;  %753 = vmatprep.mubr.bf16.mxu0 %v3018_v11  ;;  %v2165_v43 = vld [vmem:[%s4340_s5 + $0x40] sm:$0xff] }
  0x4a   : > { %946 = vmatprep.mubr.bf16.mxu1 %v3018_v11 }
  0x4b   : > { %539 = vperm.xlu1 %2891, %v389_v44   ;;  %534 = vperm.xlu0 %2890, %v388_v45   ;;  %v2168_v44 = vld [vmem:[%s4340_s5 + $0x58] sm:$0xff]  ;;  %v2167_v45 = vld [vmem:[%s4340_s5 + $0x50] sm:$0xff] }
  0x4f   : > { %529 = vperm.xlu1 %2891, %v387_v46   ;;  %524 = vperm.xlu0 %2890, %v386_v47   ;;  %v2170_v46 = vld [vmem:[%s4340_s5 + $0x68] sm:$0xff]  ;;  %v2169_v47 = vld [vmem:[%s4340_s5 + $0x60] sm:$0xff] }
  0x50   : > { %2782 = vmatmul.mubr.msk.bf16.gmra.mxu0 %vm632_vm0, %v2896_v48 }
  0x51   : > { %2798 = vmatmul.mubr.msk.bf16.gmra.mxu1 %vm632_vm0, %v2896_v48  ;;  %763 = vmatprep.mubr.bf16.mxu0 %v3018_v11  ;;  %v2172_v48 = vld [vmem:[%s4340_s5 + $0x78] sm:$0xff] }
  0x52   : > { %956 = vmatprep.mubr.bf16.mxu1 %v3018_v11 }
  0x53   : > { %519 = vperm.xlu1 %2891, %v385_v49   ;;  %514 = vperm.xlu0 %2890, %v384_v50   ;;  %v2171_v49 = vld [vmem:[%s4340_s5 + $0x70] sm:$0xff]  ;;  %v2174_v50 = vld [vmem:[%s4340_s5 + $0x88] sm:$0xff] }
  0x57   : > { %509 = vperm.xlu1 %2891, %v383_v51   ;;  %504 = vperm.xlu0 %2890, %v382_v52   ;;  %v2173_v51 = vld [vmem:[%s4340_s5 + $0x80] sm:$0xff]  ;;  %v2176_v52 = vld [vmem:[%s4340_s5 + $0x98] sm:$0xff] }
  0x58   : > { %2783 = vmatmul.mubr.msk.bf16.gmra.mxu0 %vm632_vm0, %v2897_v53 }
  0x59   : > { %2799 = vmatmul.mubr.msk.bf16.gmra.mxu1 %vm632_vm0, %v2897_v53  ;;  %773 = vmatprep.mubr.bf16.mxu0 %v3018_v11  ;;  %v2175_v53 = vld [vmem:[%s4340_s5 + $0x90] sm:$0xff] }
  0x5a   : > { %966 = vmatprep.mubr.bf16.mxu1 %v3018_v11 }
  0x5b   : > { %499 = vperm.xlu1 %2891, %v381_v54   ;;  %494 = vperm.xlu0 %2890, %v380_v55   ;;  %v2178_v54 = vld [vmem:[%s4340_s5 + $0xa8] sm:$0xff]  ;;  %v2177_v55 = vld [vmem:[%s4340_s5 + $0xa0] sm:$0xff] }
  0x5f   : > { %489 = vperm.xlu1 %2891, %v379_v56   ;;  %484 = vperm.xlu0 %2890, %v378_v57   ;;  %v2180_v57 = vld [vmem:[%s4340_s5 + $0xb8] sm:$0xff] }
  0x60   : > { %2784 = vmatmul.mubr.msk.bf16.gmra.mxu0 %vm632_vm0, %v2898_v58 }
  0x61   : > { %2800 = vmatmul.mubr.msk.bf16.gmra.mxu1 %vm632_vm0, %v2898_v58  ;;  %783 = vmatprep.mubr.bf16.mxu0 %v3018_v11  ;;  %v2179_v58 = vld [vmem:[%s4340_s5 + $0xb0] sm:$0xff] }
  0x62   : > { %976 = vmatprep.mubr.bf16.mxu1 %v3018_v11 }
  0x63   : > { %479 = vperm.xlu1 %2891, %v377_v59   ;;  %474 = vperm.xlu0 %2890, %v376_v60   ;;  %v2182_v60 = vld [vmem:[%s4340_s5 + $0xc8] sm:$0xff] }
  0x67   : > { %1330 = vperm.xlu1 %2891, %v1292_v61   ;;  %1325 = vperm.xlu0 %2890, %v1291_v62   ;;  %v2181_v61 = vld [vmem:[%s4340_s5 + $0xc0] sm:$0xff] }
  0x68   : > { %2785 = vmatmul.mubr.msk.bf16.gmra.mxu0 %vm632_vm0, %v2899_v63 }
  0x69   : > { %2801 = vmatmul.mubr.msk.bf16.gmra.mxu1 %vm632_vm0, %v2899_v63  ;;  %793 = vmatprep.mubr.bf16.mxu0 %v3018_v11 }
  0x6a   : > { %986 = vmatprep.mubr.bf16.mxu1 %v3018_v11 }
  0x6b   : > { %1340 = vperm.xlu1 %2891, %v1294_v0   ;;  %1335 = vperm.xlu0 %2890, %v1293_v1   ;;  %v2183_v0 = vld [vmem:[%s4340_s5 + $0xd0] sm:$0xff]  ;;  %v1319_v1 = vld [vmem:[%s4339_s4 + $0xe0] sm:$0xff] }
  0x6f   : > { %1350 = vperm.xlu1 %2891, %v1296_v2   ;;  %1345 = vperm.xlu0 %2890, %v1295_v3   ;;  %v2184_v3 = vld [vmem:[%s4340_s5 + $0xd8] sm:$0xff] }
  0x70   : > { %2786 = vmatmul.mubr.msk.bf16.gmra.mxu0 %vm632_vm0, %v2900_v4 }
  0x71   : > { %2802 = vmatmul.mubr.msk.bf16.gmra.mxu1 %vm632_vm0, %v2900_v4  ;;  %803 = vmatprep.mubr.bf16.mxu0 %v3018_v11  ;;  %v1320_v4 = vld [vmem:[%s4339_s4 + $0xe8] sm:$0xff] }
  0x72   : > { %996 = vmatprep.mubr.bf16.mxu1 %v3018_v11 }
  0x73   : > { %1360 = vperm.xlu1 %2891, %v1298_v5   ;;  %1355 = vperm.xlu0 %2890, %v1297_v6   ;;  %v2185_v6 = vld [vmem:[%s4340_s5 + $0xe0] sm:$0xff] }
  0x77   : > { %1370 = vperm.xlu1 %2891, %v1300_v7   ;;  %1365 = vperm.xlu0 %2890, %v1299_v8   ;;  %v1321_v7 = vld [vmem:[%s4339_s4 + $0xf0] sm:$0xff] }
  0x78   : > { %2787 = vmatmul.mubr.msk.bf16.gmra.mxu0 %vm632_vm0, %v2901_v9 }
  0x79   : > { %2803 = vmatmul.mubr.msk.bf16.gmra.mxu1 %vm632_vm0, %v2901_v9  ;;  %813 = vmatprep.mubr.bf16.mxu0 %v3018_v11 }
  0x7a   : > { %1006 = vmatprep.mubr.bf16.mxu1 %v3018_v11 }
  0x7b   : > { %1380 = vperm.xlu1 %2891, %v1302_v10   ;;  %1375 = vperm.xlu0 %2890, %v1301_v12   ;;  %v2186_v10 = vld [vmem:[%s4340_s5 + $0xe8] sm:$0xff]  ;;  %v1322_v12 = vld [vmem:[%s4339_s4 + $0xf8] sm:$0xff] }
  0x7f   : > { %1390 = vperm.xlu1 %2891, %v1304_v13   ;;  %1385 = vperm.xlu0 %2890, %v1303_v14   ;;  %v2188_v14 = vld [vmem:[%s4340_s5 + $0xf8] sm:$0xff] }
  0x80   : > { %2788 = vmatmul.mubr.msk.bf16.gmra.mxu0 %vm632_vm0, %v2902_v15 }
  0x81   : > { %2804 = vmatmul.mubr.msk.bf16.gmra.mxu1 %vm632_vm0, %v2902_v15  ;;  %823 = vmatprep.mubr.bf16.mxu0 %v3018_v11  ;;  %v2187_v15 = vld [vmem:[%s4340_s5 + $0xf0] sm:$0xff] }
  0x82   : > { %1016 = vmatprep.mubr.bf16.mxu1 %v3018_v11 }
  0x83   : > { %1400 = vperm.xlu1 %2891, %v1306_v16   ;;  %1395 = vperm.xlu0 %2890, %v1305_v17   ;;  %v2625_v17 = vld [vmem:[#allocation2] sm:$0x1] }
  0x87   : > { %1410 = vperm.xlu1 %2891, %v1308_v18   ;;  %1405 = vperm.xlu0 %2890, %v1307_v19  }
  0x88   : > { %2789 = vmatmul.mubr.msk.bf16.gmra.mxu0 %vm632_vm0, %v2903_v20 }
  0x89   : > { %2805 = vmatmul.mubr.msk.bf16.gmra.mxu1 %vm632_vm0, %v2903_v20  ;;  %833 = vmatprep.mubr.bf16.mxu0 %v3018_v11 }
  0x8a   : > { %1026 = vmatprep.mubr.bf16.mxu1 %v3018_v11 }
  0x8b   : > { %1420 = vperm.xlu1 %2891, %v1310_v21   ;;  %1415 = vperm.xlu0 %2890, %v1309_v22  }
  0x8f   : > { %1430 = vperm.xlu1 %2891, %v1312_v23   ;;  %1425 = vperm.xlu0 %2890, %v1311_v24  }
  0x90   : > { %2790 = vmatmul.mubr.msk.bf16.gmra.mxu0 %vm632_vm0, %v2904_v25 }
  0x91   : > { %2806 = vmatmul.mubr.msk.bf16.gmra.mxu1 %vm632_vm0, %v2904_v25  ;;  %843 = vmatprep.mubr.bf16.mxu0 %v3018_v11 }
  0x92   : > { %1036 = vmatprep.mubr.bf16.mxu1 %v3018_v11 }
  0x93   : > { %1440 = vperm.xlu1 %2891, %v1314_v26   ;;  %1435 = vperm.xlu0 %2890, %v1313_v27  }
  0x97   : > { %1450 = vperm.xlu1 %2891, %v1316_v28   ;;  %1445 = vperm.xlu0 %2890, %v1315_v29  }
  0x98   : > { %2791 = vmatmul.mubr.msk.bf16.gmra.mxu0 %vm632_vm0, %v2905_v30 }
  0x99   : > { %2807 = vmatmul.mubr.msk.bf16.gmra.mxu1 %vm632_vm0, %v2905_v30  ;;  %853 = vmatprep.mubr.bf16.mxu0 %v3018_v11 }
  0x9a   : > { %1046 = vmatprep.mubr.bf16.mxu1 %v3018_v11 }
  0x9b   : > { %1460 = vperm.xlu1 %2891, %v1318_v31   ;;  %1455 = vperm.xlu0 %2890, %v1317_v32  }
  0x9f   : > { %2196 = vperm.xlu1 %2891, %v2158_v33   ;;  %2191 = vperm.xlu0 %2890, %v2157_v34  }
  0xa0   : > { %2792 = vmatmul.mubr.msk.bf16.gmra.mxu0 %vm632_vm0, %v2906_v35 }
  0xa1   : > { %2808 = vmatmul.mubr.msk.bf16.gmra.mxu1 %vm632_vm0, %v2906_v35  ;;  %863 = vmatprep.mubr.bf16.mxu0 %v3018_v11 }
  0xa2   : > { %1056 = vmatprep.mubr.bf16.mxu1 %v3018_v11  ;;  %v2164_v11 = vld [vmem:[%s4340_s5 + $0x38] sm:$0xff]  ;;  %v3484_v56 = vpop.permute.xlu0 %464  ;;  %v3492_v59 = vpop.permute.xlu1 %454 }
  0xa3   : > { %2206 = vperm.xlu1 %2891, %v2160_v36   ;;  %2201 = vperm.xlu0 %2890, %v2159_v37  }
  0xa6   : > { %v3500_v62 = vpop.permute.xlu0 %469  ;;  %v3502_v63 = vpop.permute.xlu1 %459 }
  0xa7   : > { %2216 = vperm.xlu1 %2891, %v2162_v38   ;;  %2211 = vperm.xlu0 %2890, %v2161_v39  }
  0xa8   : > { %2793 = vmatmul.mubr.msk.bf16.gmra.mxu0 %vm632_vm0, %v2907_v40 }
  0xa9   : > { %2809 = vmatmul.mubr.msk.bf16.gmra.mxu1 %vm632_vm0, %v2907_v40 }
  0xaa   : > { %v3510_v2 = vpop.permute.xlu0 %444  ;;  %v3518_v5 = vpop.permute.xlu1 %449 }
  0xab   : > { %2226 = vperm.xlu1 %2891, %v2164_v11   ;;  %2221 = vperm.xlu0 %2890, %v2163_v41  }
  0xae   : > { %v3526_v8 = vpop.permute.xlu0 %434  ;;  %v3528_v9 = vpop.permute.xlu1 %439 }
  0xaf   : > { %2236 = vperm.xlu1 %2891, %v2166_v42   ;;  %2231 = vperm.xlu0 %2890, %v2165_v43  }
  0xb2   : > { %v3536_v13 = vpop.permute.xlu0 %424  ;;  %v3544_v16 = vpop.permute.xlu1 %429 }
  0xb3   : > { %2246 = vperm.xlu1 %2891, %v2168_v44   ;;  %2241 = vperm.xlu0 %2890, %v2167_v45  }
  0xb6   : > { %v3546_v18 = vpop.permute.xlu0 %414  ;;  %v3548_v19 = vpop.permute.xlu1 %419 }
  0xb7   : > { %2256 = vperm.xlu1 %2891, %v2170_v46   ;;  %2251 = vperm.xlu0 %2890, %v2169_v47  }
  0xba   : > { %v3550_v20 = vpop.permute.xlu0 %404  ;;  %v3552_v21 = vpop.permute.xlu1 %409 }
  0xbb   : > { %2266 = vperm.xlu1 %2891, %v2172_v48   ;;  %2261 = vperm.xlu0 %2890, %v2171_v49  }
  0xbe   : > { %v3554_v24 = vpop.permute.xlu0 %394  ;;  %v3560_v27 = vpop.permute.xlu1 %399 }
  0xbf   : > { %2276 = vperm.xlu1 %2891, %v2174_v50   ;;  %2271 = vperm.xlu0 %2890, %v2173_v51   ;;  %4366 = vst [vmem:[#allocation7_spill] sm:$0xff] %v3554_v24  ;;  %4369 = vst [vmem:[#allocation10_spill] sm:$0xff] %v3560_v27 }
  0xc3   : > { %2286 = vperm.xlu1 %2891, %v2176_v52   ;;  %2281 = vperm.xlu0 %2890, %v2175_v53  }
  0xc7   : > { %2296 = vperm.xlu1 %2891, %v2178_v54   ;;  %2291 = vperm.xlu0 %2890, %v2177_v55  }
  0xcb   : > { %2306 = vperm.xlu1 %2891, %v2180_v57   ;;  %2301 = vperm.xlu0 %2890, %v2179_v58  }
  0xcf   : > { %2316 = vperm.xlu1 %2891, %v2182_v60   ;;  %2311 = vperm.xlu0 %2890, %v2181_v61  }
  0xd3   : > { %2321 = vperm.xlu1 %2891, %v2183_v0   ;;  %1465 = vperm.xlu0 %2890, %v1319_v1  }
  0xd7   : > { %2326 = vperm.xlu1 %2891, %v2184_v3   ;;  %1470 = vperm.xlu0 %2890, %v1320_v4  }
  0xdb   : > { %2331 = vperm.xlu1 %2891, %v2185_v6   ;;  %1475 = vperm.xlu0 %2890, %v1321_v7  }
  0xdf   : > { %2336 = vperm.xlu1 %2891, %v2186_v10   ;;  %1480 = vperm.xlu0 %2890, %v1322_v12   ;;  %v3584_v12 = vpop.permute.xlu0 %544 }
  0xe0   : > { %4375 = vst [vmem:[#allocation16_spill] sm:$0xff] %v3584_v12 }
  0xe3   : > { %2346 = vperm.xlu1 %2891, %v2188_v14   ;;  %2341 = vperm.xlu0 %2890, %v2187_v15  }
  0xe7   : > { %2628 = vperm.xlu0 %2890, %v2625_v17   ;;  %v3586_v17 = vpop.permute.xlu1 %549 }
  0xe8   : > { %4376 = vst [vmem:[#allocation17_spill] sm:$0xff] %v3586_v17 }
  0xf0   : > { %v715_v22 = vpop.f32.mrf.mxu0 }
  0xf1   : > { %v908_v23 = vpop.f32.mrf.mxu1  ;;  %v716_v28 = vadd.f32 %v715_v22, %v3554_v24 }
  0xf2   : > { %v3556_v25 = vpop.f32.mrf.mxu0  ;;  %v909_v29 = vadd.f32 %v908_v23, %v3554_v24 }
  0xf3   : > { %4367 = vst [vmem:[#allocation8_spill] sm:$0xff] %v3556_v25  ;;  %v3558_v26 = vpop.f32.mrf.mxu1  ;;  %v1067_v36 = vmax.f32 %v716_v28, 0.0 }
  0xf4   : > { %4368 = vst [vmem:[#allocation9_spill] sm:$0xff] %v3558_v26  ;;  %v719_v30 = vpop.f32.mrf.mxu0  ;;  %v1069_v37 = vmax.f32 %v909_v29, 0.0 }
  0xf5   : > { %v912_v31 = vpop.f32.mrf.mxu1  ;;  %v720_v32 = vadd.f32 %v719_v30, %v3560_v27  ;;  %v3588_v30 = vpop.permute.xlu0 %534 }
  0xf6   : > { %v913_v33 = vadd.f32 %v912_v31, %v3560_v27  ;;  %v3566_v34 = vpop.f32.mrf.mxu0  ;;  %4377 = vst [vmem:[#allocation18_spill] sm:$0xff] %v3588_v30 }
  0xf7   : > { %v3568_v35 = vpop.f32.mrf.mxu1  ;;  %v1071_v38 = vmax.f32 %v720_v32, 0.0 }
  0xf8   : > { %4370 = vst [vmem:[#allocation11_spill] sm:$0xff] %v3568_v35  ;;  %v1073_v39 = vmax.f32 %v913_v33, 0.0  ;;  %v725_v40 = vpop.f32.mrf.mxu0  ;;  %v3590_v33 = vpop.permute.xlu1 %539 }
  0xf9   : > { %v918_v11 = vpop.f32.mrf.mxu1  ;;  %v3570_v41 = vpack.c.bf16 %v1071_v38, %v1067_v36  ;;  %v726_v45 = vadd.f32 %v725_v40, %v3550_v20  ;;  %4378 = vst [vmem:[#allocation19_spill] sm:$0xff] %v3590_v33  ;;  %v2910_v40 = vld [vmem:[%s4338_s3 + $0x4] ss:$8 sps:$4 sm:$0xff]   ;;  %v3615_v33 = vadd.f32 %v3566_v34, %v3560_v27 }
  0xfa   : > { %v3572_v42 = vpack.c.bf16 %v1073_v39, %v1069_v37  ;;  %v727_v43 = vpop.f32.mrf.mxu0  ;;  %v919_v46 = vadd.f32 %v918_v11, %v3550_v20  ;;  %v3599_v11 = vpop.permute.xlu0 %524  ;;  %1675 = vmatprep.mubr.bf16.mxu0 %v2910_v40  ;;  %1868 = vmatprep.mubr.bf16.mxu1 %v2910_v40 }
  0xfb   : > { %4371 = vst [vmem:[#allocation12_spill] sm:$0xff] %v3570_v41  ;;  %v920_v44 = vpop.f32.mrf.mxu1  ;;  %v1075_v53 = vmax.f32 %v726_v45, 0.0  ;;  %4379 = vst [vmem:[#allocation20_spill] sm:$0xff] %v3599_v11  ;;  %v3618_v40 = vadd.f32 %v727_v43, %v3550_v20 }
  0xfc   : > { %4372 = vst [vmem:[#allocation13_spill] sm:$0xff] %v3572_v42  ;;  %v729_v47 = vpop.f32.mrf.mxu0  ;;  %v1077_v54 = vmax.f32 %v919_v46, 0.0  ;;  %4383 = vst [vmem:[#allocation24_spill] sm:$0xff] %v3615_v33  ;;  %v3624_v11 = vadd.f32 %v920_v44, %v3550_v20 }
  0xfd   : > { %v922_v48 = vpop.f32.mrf.mxu1  ;;  %v730_v49 = vadd.f32 %v729_v47, %v3552_v21  ;;  %v3605_v47 = vpop.permute.xlu1 %529  ;;  %4384 = vst [vmem:[#allocation25_spill] sm:$0xff] %v3618_v40 }
  0xfe   : > { %v923_v50 = vadd.f32 %v922_v48, %v3552_v21  ;;  %v731_v51 = vpop.f32.mrf.mxu0  ;;  %4380 = vst [vmem:[#allocation21_spill] sm:$0xff] %v3605_v47  ;;  %4386 = vst [vmem:[#allocation27_spill] sm:$0xff] %v3624_v11 }
  0xff   : > { %v924_v52 = vpop.f32.mrf.mxu1  ;;  %v1079_v55 = vmax.f32 %v730_v49, 0.0 }
 0x100   : > { %v1081_v57 = vmax.f32 %v923_v50, 0.0  ;;  %v735_v58 = vpop.f32.mrf.mxu0  ;;  %v3638_v43 = vadd.f32 %v924_v52, %v3552_v21 }
 0x101   : > { %v3578_v60 = vpop.f32.mrf.mxu1  ;;  %v3580_v61 = vpack.c.bf16 %v1079_v55, %v1075_v53  ;;  %v3611_v30 = vpop.permute.xlu1 %519 }
 0x102   : > { %v3582_v0 = vpack.c.bf16 %v1081_v57, %v1077_v54  ;;  %v737_v1 = vpop.f32.mrf.mxu0  ;;  %v3609_v54 = vpop.permute.xlu0 %514  ;;  %4382 = vst [vmem:[#allocation23_spill] sm:$0xff] %v3611_v30  ;;  %4390 = vst [vmem:[#allocation31_spill] sm:$0xff] %v3638_v43 }
 0x103   : > { %4373 = vst [vmem:[#allocation14_spill] sm:$0xff] %v3580_v61  ;;  %v930_v3 = vpop.f32.mrf.mxu1  ;;  %4381 = vst [vmem:[#allocation22_spill] sm:$0xff] %v3609_v54  ;;  %v3627_v54 = vadd.f32 %v731_v51, %v3552_v21  ;;  %v3648_v51 = vadd.f32 %v737_v1, %v3546_v18 }
 0x104   : > { %4374 = vst [vmem:[#allocation15_spill] sm:$0xff] %v3582_v0  ;;  %v739_v4 = vpop.f32.mrf.mxu0 }
 0x105   : > { %v932_v6 = vpop.f32.mrf.mxu1  ;;  %4387 = vst [vmem:[#allocation28_spill] sm:$0xff] %v3627_v54 }
 0x106   : > { %v741_v7 = vpop.f32.mrf.mxu0  ;;  %v3635_v0 = vpop.permute.xlu0 %504 }
 0x107   : > { %v934_v10 = vpop.f32.mrf.mxu1  ;;  %v3621_v47 = vadd.f32 %v741_v7, %v3548_v19  ;;  %4389 = vst [vmem:[#allocation30_spill] sm:$0xff] %v3635_v0  ;;  %v3641_v7 = vadd.f32 %v735_v58, %v3546_v18  ;;  %v3659_v0 = vpop.permute.xlu1 %509 }
 0x108   : > { %v745_v14 = vpop.f32.mrf.mxu0  ;;  %v3630_v30 = vadd.f32 %v934_v10, %v3548_v19  ;;  %v3651_v10 = vadd.f32 %v930_v3, %v3546_v18  ;;  %4394 = vst [vmem:[#allocation35_spill] sm:$0xff] %v3659_v0 }
 0x109   : > { %v938_v15 = vpop.f32.mrf.mxu1  ;;  %4385 = vst [vmem:[#allocation26_spill] sm:$0xff] %v3621_v47  ;;  %4391 = vst [vmem:[#allocation32_spill] sm:$0xff] %v3641_v7 }
 0x10a   : > { %v747_v22 = vpop.f32.mrf.mxu0  ;;  %4388 = vst [vmem:[#allocation29_spill] sm:$0xff] %v3630_v30  ;;  %v3676_v61 = vadd.f32 %v938_v15, %v3536_v13  ;;  %v3691_v1 = vpop.permute.xlu0 %494 }
 0x10b   : > { %v940_v23 = vpop.f32.mrf.mxu1  ;;  %v748_v42 = vadd.f32 %v747_v22, %v3536_v13  ;;  %4397 = vst [vmem:[#allocation38_spill] sm:$0xff] %v3691_v1 }
 0x10c   : > { %v749_v28 = vpop.f32.mrf.mxu0  ;;  %v3644_v20 = vadd.f32 %v940_v23, %v3536_v13  ;;  %v3662_v23 = vadd.f32 %v739_v4, %v3548_v19 }
 0x10d   : > { %v942_v29 = vpop.f32.mrf.mxu1  ;;  %v3654_v22 = vadd.f32 %v749_v28, %v3544_v16  ;;  %v1092_v0 = vmax.f32 %v748_v42, 0.0 }
 0x10e   : > { %v751_v31 = vpop.f32.mrf.mxu0  ;;  %v3657_v21 = vadd.f32 %v942_v29, %v3544_v16  ;;  %4395 = vst [vmem:[#allocation36_spill] sm:$0xff] %v3662_v23  ;;  %v3673_v29 = vadd.f32 %v745_v14, %v3536_v13  ;;  %v3743_v25 = vpop.permute.xlu0 %484 }
 0x10f   : > { %v944_v32 = vpop.f32.mrf.mxu1  ;;  %v752_v44 = vadd.f32 %v751_v31, %v3544_v16  ;;  %4392 = vst [vmem:[#allocation33_spill] sm:$0xff] %v3654_v22  ;;  %v3665_v31 = vadd.f32 %v932_v6, %v3548_v19 }
 0x110   : > { %v3592_v36 = vpop.f32.mrf.mxu0  ;;  %4393 = vst [vmem:[#allocation34_spill] sm:$0xff] %v3657_v21  ;;  %v3669_v3 = vadd.f32 %v944_v32, %v3544_v16 }
 0x111   : > { %v3594_v37 = vpop.f32.mrf.mxu1  ;;  %4396 = vst [vmem:[#allocation37_spill] sm:$0xff] %v3665_v31  ;;  %v1096_v19 = vmax.f32 %v752_v44, 0.0 }
 0x112   : > { %v757_v38 = vpop.f32.mrf.mxu0  ;;  %v475_v54 = vpop.permute.xlu0 %474 }
 0x113   : > { %v950_v39 = vpop.f32.mrf.mxu1  ;;  %v3680_v6 = vadd.f32 %v757_v38, %v3526_v8  ;;  %v3722_v40 = vpack.c.bf16 %v1096_v19, %v1092_v0 }
 0x114   : > { %v3601_v45 = vpop.f32.mrf.mxu0  ;;  %v3683_v16 = vadd.f32 %v950_v39, %v3526_v8 }
 0x115   : > { %v3603_v46 = vpop.f32.mrf.mxu1  ;;  %4399 = vst [vmem:[#allocation40_spill] sm:$0xff] %v3722_v40 }
 0x116   : > { %v761_v48 = vpop.f32.mrf.mxu0 }
 0x117   : > { %v954_v49 = vpop.f32.mrf.mxu1  ;;  %v3688_v28 = vadd.f32 %v761_v48, %v3528_v9  ;;  %v3703_v48 = vadd.f32 %v3592_v36, %v3526_v8 }
 0x118   : > { %v765_v50 = vpop.f32.mrf.mxu0  ;;  %v3695_v38 = vadd.f32 %v954_v49, %v3528_v9 }
 0x119   : > { %v3607_v53 = vpop.f32.mrf.mxu1  ;;  %v3698_v39 = vadd.f32 %v765_v50, %v3510_v2  ;;  %v3715_v50 = vpop.permute.xlu1 %499 }
 0x11a   : > { %v767_v55 = vpop.f32.mrf.mxu0  ;;  %4398 = vst [vmem:[#allocation39_spill] sm:$0xff] %v3715_v50  ;;  %v3737_v0 = vadd.f32 %v3607_v53, %v3510_v2 }
 0x11b   : > { %v960_v57 = vpop.f32.mrf.mxu1  ;;  %v768_v32 = vadd.f32 %v767_v55, %v3510_v2 }
 0x11c   : > { %v769_v17 = vpop.f32.mrf.mxu0  ;;  %v3710_v14 = vadd.f32 %v960_v57, %v3510_v2 }
 0x11d   : > { %v962_v12 = vpop.f32.mrf.mxu1  ;;  %v3713_v44 = vadd.f32 %v769_v17, %v3518_v5  ;;  %v3730_v17 = vadd.f32 %v3603_v46, %v3528_v9  ;;  %v1108_v19 = vmax.f32 %v768_v32, 0.0  ;;  %v3763_v24 = vpop.permute.xlu1 %489 }
 0x11e   : > { %v771_v41 = vpop.f32.mrf.mxu0  ;;  %v3720_v36 = vadd.f32 %v962_v12, %v3518_v5 }
 0x11f   : > { %v3633_v34 = vpop.f32.mrf.mxu1  ;;  %v772_v13 = vadd.f32 %v771_v41, %v3518_v5  ;;  %v3707_v41 = vadd.f32 %v3594_v37, %v3526_v8  ;;  %v3726_v8 = vadd.f32 %v3601_v45, %v3528_v9 }
 0x120   : > { %v775_v52 = vpop.f32.mrf.mxu0  ;;  %v3748_v12 = vadd.f32 %v3633_v34, %v3518_v5 }
 0x121   : > { %v968_v58 = vpop.f32.mrf.mxu1  ;;  %v1112_v57 = vmax.f32 %v772_v13, 0.0  ;;  %v3751_v2 = vadd.f32 %v775_v52, %v3492_v59  ;;  %v480_v22 = vpop.permute.xlu1 %479 }
 0x122   : > { %v777_v33 = vpop.f32.mrf.mxu0 }
 0x123   : > { %v970_v4 = vpop.f32.mrf.mxu1  ;;  %v778_v9 = vadd.f32 %v777_v33, %v3492_v59  ;;  %v3754_v32 = vpack.c.bf16 %v1112_v57, %v1108_v19  ;;  %v3757_v33 = vadd.f32 %v968_v58, %v3492_v59 }
 0x124   : > { %v779_v42 = vpop.f32.mrf.mxu0  ;;  %v971_v46 = vadd.f32 %v970_v4, %v3492_v59 }
 0x125   : > { %v972_v15 = vpop.f32.mrf.mxu1  ;;  %v3760_v4 = vadd.f32 %v779_v42, %v3502_v63  ;;  %v1116_v57 = vmax.f32 %v778_v9, 0.0 }
 0x126   : > { %v781_v49 = vpop.f32.mrf.mxu0  ;;  %v1118_v59 = vmax.f32 %v971_v46, 0.0  ;;  %v973_v7 = vadd.f32 %v972_v15, %v3502_v63 }
 0x127   : > { %v974_v11 = vpop.f32.mrf.mxu1  ;;  %v782_v53 = vadd.f32 %v781_v49, %v3502_v63 }
 0x128   : > { %v785_v50 = vpop.f32.mrf.mxu0  ;;  %v975_v26 = vadd.f32 %v974_v11, %v3502_v63 }
 0x129   : > { %v978_v55 = vpop.f32.mrf.mxu1  ;;  %v786_v58 = vadd.f32 %v785_v50, %v3484_v56  ;;  %v1120_v43 = vmax.f32 %v782_v53, 0.0 }
 0x12a   : > { %v787_v13 = vpop.f32.mrf.mxu0  ;;  %v979_v42 = vadd.f32 %v978_v55, %v3484_v56 }
 0x12b   : > { %v980_v37 = vpop.f32.mrf.mxu1  ;;  %v788_v5 = vadd.f32 %v787_v13, %v3484_v56  ;;  %v1123_v27 = vmax.f32 %v786_v58, 0.0 }
 0x12c   : > { %v789_v1 = vpop.f32.mrf.mxu0  ;;  %v981_v34 = vadd.f32 %v980_v37, %v3484_v56  ;;  %v1119_v37 = vmax.f32 %v3760_v4, 0.0  ;;  %v1125_v21 = vmax.f32 %v979_v42, 0.0 }
 0x12d   : > { %v982_v45 = vpop.f32.mrf.mxu1  ;;  %v790_v52 = vadd.f32 %v789_v1, %v3500_v62  ;;  %v1122_v1 = vmax.f32 %v975_v26, 0.0  ;;  %v1124_v50 = vmax.f32 %v788_v5, 0.0 }
 0x12e   : > { %v983_v49 = vadd.f32 %v982_v45, %v3500_v62  ;;  %v791_v19 = vpop.f32.mrf.mxu0  ;;  %v1126_v35 = vmax.f32 %v981_v34, 0.0 }
 0x12f   : > { %v984_v11 = vpop.f32.mrf.mxu1  ;;  %v792_v30 = vadd.f32 %v791_v19, %v3500_v62  ;;  %v1127_v47 = vmax.f32 %v790_v52, 0.0  ;;  %v1254_v34 = vpack.c.bf16 %v1122_v1, %v1118_v59 }
 0x130   : > { %v985_v13 = vadd.f32 %v984_v11, %v3500_v62  ;;  %v1129_v45 = vmax.f32 %v983_v49, 0.0  ;;  %v795_v9 = vpop.f32.mrf.mxu0  ;;  %v1121_v62 = vmax.f32 %v973_v7, 0.0  ;;  %v1252_v11 = vpack.c.bf16 %v1120_v43, %v1116_v57 }
 0x131   : > { %v988_v46 = vpop.f32.mrf.mxu1  ;;  %v1128_v56 = vmax.f32 %v792_v30, 0.0  ;;  %v796_v63 = vadd.f32 %v795_v9, %v475_v54  ;;  %v1255_v52 = vpack.c.bf16 %v1127_v47, %v1123_v27  ;;  %v1114_v30 = vmax.f32 %v3748_v12, 0.0 }
 0x132   : > { %v1130_v55 = vmax.f32 %v985_v13, 0.0  ;;  %v989_v15 = vadd.f32 %v988_v46, %v475_v54  ;;  %v797_v53 = vpop.f32.mrf.mxu0  ;;  %v1257_v49 = vpack.c.bf16 %v1129_v45, %v1125_v21  ;;  %v1115_v13 = vmax.f32 %v3751_v2, 0.0 }
 0x133   : > { %v990_v19 = vpop.f32.mrf.mxu1  ;;  %v1256_v4 = vpack.c.bf16 %v1128_v56, %v1124_v50  ;;  %v798_v31 = vadd.f32 %v797_v53, %v475_v54  ;;  %v1117_v7 = vmax.f32 %v3757_v33, 0.0  ;;  %v1131_v43 = vmax.f32 %v796_v63, 0.0 }
 0x134   : > { %v1258_v26 = vpack.c.bf16 %v1130_v55, %v1126_v35  ;;  %v991_v23 = vadd.f32 %v990_v19, %v475_v54  ;;  %v799_v40 = vpop.f32.mrf.mxu0  ;;  %v1133_v57 = vmax.f32 %v989_v15, 0.0  ;;  %v1109_v55 = vmax.f32 %v3737_v0, 0.0 }
 0x135   : > { %v992_v5 = vpop.f32.mrf.mxu1  ;;  %v800_v58 = vadd.f32 %v799_v40, %v480_v22  ;;  %1643 = vmatprep.subr.bf16.mxu0 %v1256_v4  ;;  %v1251_v40 = vpack.c.bf16 %v1119_v37, %v1115_v13  ;;  %v1253_v12 = vpack.c.bf16 %v1121_v62, %v1117_v7  ;;  %v1132_v59 = vmax.f32 %v798_v31, 0.0 }
 0x136   : > { %v993_v42 = vadd.f32 %v992_v5, %v480_v22  ;;  %1836 = vmatprep.subr.bf16.mxu1 %v1258_v26  ;;  %v801_v35 = vpop.f32.mrf.mxu0  ;;  %1644 = vmatpush1.bf16.msra.mxu0 %v1255_v52  ;;  %v1134_v1 = vmax.f32 %v991_v23, 0.0  ;;  %v4402_v63 = vmax.f32 %v3710_v14, 0.0  ;;  %v1103_v23 = vmax.f32 %v3726_v8, 0.0 }
 0x137   : > { %v994_v27 = vpop.f32.mrf.mxu1  ;;  %1837 = vmatpush1.bf16.msra.mxu1 %v1257_v49  ;;  %v1135_v47 = vmax.f32 %v800_v58, 0.0  ;;  %v802_v21 = vadd.f32 %v801_v35, %v480_v22  ;;  %1645 = vmatprep.subr.bf16.mxu0 %v1252_v11  ;;  %v1105_v19 = vmax.f32 %v3730_v17, 0.0  ;;  %v4405_v14 = vmax.f32 %v3698_v39, 0.0 }
 0x138   : > { %v1137_v54 = vmax.f32 %v993_v42, 0.0  ;;  %v995_v45 = vadd.f32 %v994_v27, %v480_v22  ;;  %1838 = vmatprep.subr.bf16.mxu1 %v1254_v34  ;;  %v805_v9 = vpop.f32.mrf.mxu0  ;;  %v1250_v15 = vpack.c.bf16 %v1114_v30, %v4402_v63  ;;  %v4406_v0 = vmax.f32 %v3713_v44, 0.0 }
 0x139   : > { %v998_v2 = vpop.f32.mrf.mxu1  ;;  %v3778_v46 = vpack.c.bf16 %v1135_v47, %v1131_v43  ;;  %v1136_v50 = vmax.f32 %v802_v21, 0.0  ;;  %v806_v22 = vadd.f32 %v805_v9, %v3743_v25  ;;  %v4407_v26 = vmax.f32 %v3720_v36, 0.0 }
 0x13a   : > { %v3780_v33 = vpack.c.bf16 %v1137_v54, %v1133_v57  ;;  %v1138_v56 = vmax.f32 %v995_v45, 0.0  ;;  %v999_v37 = vadd.f32 %v998_v2, %v3743_v25  ;;  %v807_v53 = vpop.f32.mrf.mxu0  ;;  %1646 = vmatpush1.bf16.msra.mxu0 %v1251_v40  ;;  %v1247_v4 = vpack.c.bf16 %v4406_v0, %v4405_v14  ;;  %v4425_v14 = vld [vmem:[#allocation34_spill] sm:$0xff] }
 0x13b   : > { %4400 = vst [vmem:[#allocation41_spill] sm:$0xff] %v3778_v46  ;;  %v1000_v31 = vpop.f32.mrf.mxu1  ;;  %1839 = vmatpush1.bf16.msra.mxu1 %v1253_v12  ;;  %v3789_v62 = vpack.c.bf16 %v1136_v50, %v1132_v59  ;;  %1647 = vmatprep.subr.bf16.mxu0 %v3754_v32  ;;  %v1249_v52 = vpack.c.bf16 %v4407_v26, %v1109_v55  ;;  %v4408_v30 = vmax.f32 %v3680_v6, 0.0  ;;  %v4409_v34 = vmax.f32 %v3688_v28, 0.0  ;;  %v4430_v26 = vld [vmem:[#allocation11_spill] sm:$0xff]  ;;  %v4461_v46 = vld [vmem:[#allocation21_spill] sm:$0xff] }
 0x13c   : > { %4401 = vst [vmem:[#allocation42_spill] sm:$0xff] %v3780_v33  ;;  %v3791_v11 = vpack.c.bf16 %v1138_v56, %v1134_v1  ;;  %v808_v49 = vadd.f32 %v807_v53, %v3743_v25  ;;  %v1001_v8 = vadd.f32 %v1000_v31, %v3743_v25  ;;  %1840 = vmatprep.subr.bf16.mxu1 %v1250_v15  ;;  %v809_v17 = vpop.f32.mrf.mxu0  ;;  %v4410_v39 = vmax.f32 %v3683_v16, 0.0  ;;  %v4422_v53 = vld [vmem:[#allocation37_spill] sm:$0xff]  ;;  %v4460_v33 = vld [vmem:[#allocation20_spill] sm:$0xff] }
 0x13d   : > { %4403 = vst [vmem:[#allocation43_spill] sm:$0xff] %v3789_v62  ;;  %v1002_v5 = vpop.f32.mrf.mxu1  ;;  %v1244_v32 = vpack.c.bf16 %v4409_v34, %v4408_v30  ;;  %v4411_v44 = vmax.f32 %v3695_v38, 0.0  ;;  %v810_v36 = vadd.f32 %v809_v17, %v3763_v24  ;;  %v1099_v13 = vmax.f32 %v3703_v48, 0.0  ;;  %v4432_v17 = vld [vmem:[#allocation26_spill] sm:$0xff]  ;;  %v4434_v34 = vld [vmem:[#allocation29_spill] sm:$0xff] }
 0x13e   : > { %4404 = vst [vmem:[#allocation44_spill] sm:$0xff] %v3791_v11  ;;  %v1003_v42 = vadd.f32 %v1002_v5, %v3763_v24  ;;  %v1101_v25 = vmax.f32 %v3707_v41, 0.0  ;;  %v1139_v7 = vmax.f32 %v806_v22, 0.0  ;;  %v1141_v43 = vmax.f32 %v999_v37, 0.0  ;;  %v811_v57 = vpop.f32.mrf.mxu0  ;;  %1648 = vmatpush1.bf16.msra.mxu0 %v1247_v4  ;;  %v4429_v4 = vld [vmem:[#allocation10_spill] sm:$0xff]  ;;  %v4462_v11 = vld [vmem:[#allocation19_spill] sm:$0xff] }
 0x13f   : > { %v1246_v58 = vpack.c.bf16 %v4411_v44, %v4410_v39  ;;  %v1004_v6 = vpop.f32.mrf.mxu1  ;;  %1841 = vmatpush1.bf16.msra.mxu1 %v1249_v52  ;;  %v1143_v28 = vmax.f32 %v810_v36, 0.0  ;;  %v812_v16 = vadd.f32 %v811_v57, %v3763_v24  ;;  %1649 = vmatprep.subr.bf16.mxu0 %v1244_v32  ;;  %v1243_v27 = vpack.c.bf16 %v1103_v23, %v1099_v13  ;;  %v4423_v23 = vld [vmem:[#allocation33_spill] sm:$0xff]  ;;  %v4436_v44 = vld [vmem:[#allocation31_spill] sm:$0xff]  ;;  %v4437_v36 = vld [vmem:[#allocation32_spill] sm:$0xff] }
 0x140   : > { %v1145_v35 = vmax.f32 %v1003_v42, 0.0  ;;  %v1005_v38 = vadd.f32 %v1004_v6, %v3763_v24  ;;  %v1245_v47 = vpack.c.bf16 %v1105_v19, %v1101_v25  ;;  %v1140_v54 = vmax.f32 %v808_v49, 0.0  ;;  %v3816_v21 = vpop.f32.mrf.mxu0  ;;  %v4431_v49 = vld [vmem:[#allocation28_spill] sm:$0xff] }
 0x141   : > { %1842 = vmatprep.subr.bf16.mxu1 %v1246_v58  ;;  %v1142_v48 = vmax.f32 %v1001_v8, 0.0  ;;  %4412 = vst [vmem:[#allocation45_spill] sm:$0xff] %v3816_v21  ;;  %v3818_v41 = vpop.f32.mrf.mxu1  ;;  %v3820_v45 = vpack.c.bf16 %v1143_v28, %v1139_v7  ;;  %v1144_v12 = vmax.f32 %v812_v16, 0.0  ;;  %v929_v1 = vadd.f32 %v3578_v60, %v3546_v18  ;;  %v4439_v57 = vld [vmem:[#allocation8_spill] sm:$0xff]  ;;  %v4440_v28 = vld [vmem:[#allocation9_spill] sm:$0xff] }
 0x142   : > { %4413 = vst [vmem:[#allocation46_spill] sm:$0xff] %v3818_v41  ;;  %v3822_v40 = vpack.c.bf16 %v1145_v35, %v1141_v43  ;;  %v1146_v59 = vmax.f32 %v1005_v38, 0.0  ;;  %v1091_v24 = vmax.f32 %v3673_v29, 0.0  ;;  %v1093_v9 = vmax.f32 %v3676_v61, 0.0  ;;  %v3828_v2 = vpop.f32.mrf.mxu0  ;;  %1650 = vmatpush1.bf16.msra.mxu0 %v1243_v27  ;;  %v4420_v61 = vld [vmem:[#allocation40_spill] sm:$0xff]  ;;  %v4438_v43 = vld [vmem:[#allocation7_spill] sm:$0xff] }
 0x143   : > { %4414 = vst [vmem:[#allocation47_spill] sm:$0xff] %v3820_v45  ;;  %v3830_v50 = vpop.f32.mrf.mxu1  ;;  %1843 = vmatpush1.bf16.msra.mxu1 %v1245_v47  ;;  %v4416_v56 = vmax.f32 %v3644_v20, 0.0  ;;  %v4417_v55 = vmax.f32 %v3669_v3, 0.0  ;;  %v1084_v15 = vmax.f32 %v3648_v51, 0.0  ;;  %v1086_v22 = vmax.f32 %v3651_v10, 0.0  ;;  %1651 = vmatprep.subr.bf16.mxu0 %v4420_v61  ;;  %v4421_v29 = vld [vmem:[#allocation36_spill] sm:$0xff] }
 0x144   : > { %4415 = vst [vmem:[#allocation48_spill] sm:$0xff] %v3822_v40  ;;  %v3838_v18 = vpack.c.bf16 %v1144_v12, %v1140_v54  ;;  %v3840_v60 = vpack.c.bf16 %v1146_v59, %v1142_v48  ;;  %v1087_v37 = vmax.f32 %v4421_v29, 0.0  ;;  %v1089_v31 = vmax.f32 %v4422_v53, 0.0  ;;  %v3849_v51 = vpop.f32.mrf.mxu0  ;;  %v4441_v16 = vld [vmem:[#allocation25_spill] sm:$0xff]  ;;  %v4442_v27 = vld [vmem:[#allocation27_spill] sm:$0xff] }
 0x145   : > { %v1242_v63 = vpack.c.bf16 %v4417_v55, %v4416_v56  ;;  %v4424_v19 = vmax.f32 %v4423_v23, 0.0  ;;  %v4426_v3 = vmax.f32 %v4425_v14, 0.0  ;;  %4427 = vst [vmem:[#allocation40_spill] sm:$0xff] %v3849_v51  ;;  %v3851_v10 = vpop.f32.mrf.mxu1  ;;  %v915_v52 = vadd.f32 %v4430_v26, %v4429_v4  ;;  %v4445_v14 = vld [vmem:[#allocation15_spill] sm:$0xff] }
 0x146   : > { %4418 = vst [vmem:[#allocation49_spill] sm:$0xff] %v3838_v18  ;;  %4419 = vst [vmem:[#allocation50_spill] sm:$0xff] %v3840_v60  ;;  %v1080_v8 = vmax.f32 %v4431_v49, 0.0  ;;  %v4433_v5 = vmax.f32 %v4432_v17, 0.0  ;;  %v4435_v32 = vmax.f32 %v4434_v34, 0.0  ;;  %v1082_v58 = vmax.f32 %v4436_v44, 0.0  ;;  %v3862_v25 = vpop.f32.mrf.mxu0 }
 0x147   : > { %v1239_v20 = vpack.c.bf16 %v4424_v19, %v1091_v24  ;;  %v1241_v0 = vpack.c.bf16 %v4426_v3, %v1093_v9  ;;  %1844 = vmatprep.subr.bf16.mxu1 %v1242_v63  ;;  %4428 = vst [vmem:[#allocation36_spill] sm:$0xff] %v3851_v10  ;;  %v1083_v42 = vmax.f32 %v4437_v36, 0.0  ;;  %v1085_v13 = vmax.f32 %v929_v1, 0.0  ;;  %v3864_v7 = vpop.f32.mrf.mxu1  ;;  %v4443_v1 = vld [vmem:[#allocation24_spill] sm:$0xff]  ;;  %v4447_v49 = vld [vmem:[#allocation13_spill] sm:$0xff] }
 0x148   : > { %v1236_v30 = vpack.c.bf16 %v4433_v5, %v1084_v15  ;;  %v1238_v39 = vpack.c.bf16 %v4435_v32, %v1086_v22  ;;  %v718_v6 = vadd.f32 %v4439_v57, %v4438_v43  ;;  %v911_v35 = vadd.f32 %v4440_v28, %v4438_v43  ;;  %v3872_v12 = vpop.f32.mrf.mxu0  ;;  %v4464_v18 = vld [vmem:[#allocation17_spill] sm:$0xff] }
 0x149   : > { %1652 = vmatpush1.bf16.msra.mxu0 %v1239_v20  ;;  %1845 = vmatpush1.bf16.msra.mxu1 %v1241_v0  ;;  %v1076_v38 = vmax.f32 %v4441_v16, 0.0  ;;  %v1078_v47 = vmax.f32 %v4442_v27, 0.0  ;;  %v1235_v54 = vpack.c.bf16 %v1087_v37, %v1083_v42  ;;  %v1237_v48 = vpack.c.bf16 %v1089_v31, %v1085_v13  ;;  %v3874_v59 = vpop.f32.mrf.mxu1  ;;  %v4444_v20 = vld [vmem:[#allocation14_spill] sm:$0xff] }
 0x14a   : > { %1653 = vmatprep.subr.bf16.mxu0 %v1236_v30  ;;  %1846 = vmatprep.subr.bf16.mxu1 %v1238_v39  ;;  %v1072_v24 = vmax.f32 %v4443_v1, 0.0  ;;  %v1074_v9 = vmax.f32 %v915_v52, 0.0  ;;  %v827_v55 = vpop.f32.mrf.mxu0  ;;  %v1068_v22 = vmax.f32 %v718_v6, 0.0  ;;  %v1070_v61 = vmax.f32 %v911_v35, 0.0  ;;  %v4446_v52 = vld [vmem:[#allocation12_spill] sm:$0xff]  ;;  %v4451_v1 = vld [vmem:[#allocation39_spill] sm:$0xff] }
 0x14b   : > { %v1232_v56 = vpack.c.bf16 %v1080_v8, %v1076_v38  ;;  %v1020_v63 = vpop.f32.mrf.mxu1  ;;  %v1234_v15 = vpack.c.bf16 %v1082_v58, %v1078_v47  ;;  %v4448_v47 = vld [vmem:[#allocation38_spill] sm:$0xff] }
 0x14c   : > { %v3877_v29 = vpop.f32.mrf.mxu0  ;;  %v1228_v53 = vpack.c.bf16 %v1072_v24, %v1068_v22  ;;  %v1230_v31 = vpack.c.bf16 %v1074_v9, %v1070_v61  ;;  %v3907_v24 = vadd.f32 %v3862_v25, %v4451_v1  ;;  %v3911_v9 = vadd.f32 %v3864_v7, %v4451_v1  ;;  %v4454_v22 = vld [vmem:[#allocation30_spill] sm:$0xff] }
 0x14d   : > { %1654 = vmatpush1.bf16.msra.mxu0 %v1235_v54  ;;  %1847 = vmatpush1.bf16.msra.mxu1 %v1237_v48  ;;  %v3879_v37 = vpop.f32.mrf.mxu1  ;;  %v3899_v54 = vadd.f32 %v3828_v2, %v4448_v47  ;;  %v3903_v48 = vadd.f32 %v3830_v50, %v4448_v47  ;;  %v3914_v61 = vadd.f32 %v827_v55, %v4454_v22  ;;  %v4458_v25 = vld [vmem:[#allocation22_spill] sm:$0xff] }
 0x14e   : > { %1655 = vmatprep.subr.bf16.mxu0 %v1232_v56  ;;  %1848 = vmatprep.subr.bf16.mxu1 %v1234_v15  ;;  %v831_v23 = vpop.f32.mrf.mxu0  ;;  %4452 = vst [vmem:[#allocation34_spill] sm:$0xff] %v3907_v24  ;;  %4453 = vst [vmem:[#allocation10_spill] sm:$0xff] %v3911_v9  ;;  %v3917_v2 = vadd.f32 %v1020_v63, %v4454_v22 }
 0x14f   : > { %v1024_v19 = vpop.f32.mrf.mxu1  ;;  %4449 = vst [vmem:[#allocation37_spill] sm:$0xff] %v3899_v54  ;;  %4450 = vst [vmem:[#allocation33_spill] sm:$0xff] %v3903_v48  ;;  %v4465_v54 = vld [vmem:[#allocation18_spill] sm:$0xff] }
 0x150   : > { %v3883_v3 = vpop.f32.mrf.mxu0  ;;  %4455 = vst [vmem:[#allocation11_spill] sm:$0xff] %v3914_v61  ;;  %4456 = vst [vmem:[#allocation28_spill] sm:$0xff] %v3917_v2 }
 0x151   : > { %1656 = vmatpush1.bf16.msra.mxu0 %v4444_v20  ;;  %1849 = vmatpush1.bf16.msra.mxu1 %v4445_v14  ;;  %v3885_v0 = vpop.f32.mrf.mxu1  ;;  %v4459_v14 = vld [vmem:[#allocation23_spill] sm:$0xff] }
 0x152   : > { %1657 = vmatprep.subr.bf16.mxu0 %v1228_v53  ;;  %1850 = vmatprep.subr.bf16.mxu1 %v1230_v31  ;;  %v837_v4 = vpop.f32.mrf.mxu0  ;;  %v4457_v53 = vld [vmem:[#allocation35_spill] sm:$0xff] }
 0x153   : > { %v1030_v26 = vpop.f32.mrf.mxu1  ;;  %v3920_v31 = vadd.f32 %v831_v23, %v4457_v53  ;;  %v3923_v50 = vadd.f32 %v1024_v19, %v4457_v53  ;;  %v3926_v20 = vadd.f32 %v837_v4, %v4458_v25 }
 0x154   : > { %v3889_v8 = vpop.f32.mrf.mxu0  ;;  %v3929_v7 = vadd.f32 %v1030_v26, %v4458_v25 }
 0x155   : > { %1658 = vmatpush1.bf16.msra.mxu0 %v4446_v52  ;;  %1851 = vmatpush1.bf16.msra.mxu1 %v4447_v49  ;;  %v3891_v17 = vpop.f32.mrf.mxu1 }
 0x156   : > { %v841_v5 = vpop.f32.mrf.mxu0 }
 0x157   : > { %v1034_v30 = vpop.f32.mrf.mxu1  ;;  %v3932_v52 = vadd.f32 %v841_v5, %v4459_v14 }
 0x158   : > { %v3893_v34 = vpop.f32.mrf.mxu0  ;;  %v3935_v55 = vadd.f32 %v1034_v30, %v4459_v14 }
 0x159   : > { %v3895_v32 = vpop.f32.mrf.mxu1 }
 0x15a   : > { %v847_v39 = vpop.f32.mrf.mxu0 }
 0x15b   : > { %v1040_v44 = vpop.f32.mrf.mxu1  ;;  %v3938_v23 = vadd.f32 %v847_v39, %v4460_v33 }
 0x15c   : > { %v849_v58 = vpop.f32.mrf.mxu0  ;;  %v3941_v19 = vadd.f32 %v1040_v44, %v4460_v33  ;;  %v4463_v44 = vld [vmem:[#allocation16_spill] sm:$0xff] }
 0x15d   : > { %v1042_v36 = vpop.f32.mrf.mxu1  ;;  %v3944_v4 = vadd.f32 %v849_v58, %v4461_v46 }
 0x15e   : > { %v851_v42 = vpop.f32.mrf.mxu0  ;;  %v3947_v26 = vadd.f32 %v1042_v36, %v4461_v46 }
 0x15f   : > { %v1044_v13 = vpop.f32.mrf.mxu1  ;;  %v3950_v5 = vadd.f32 %v851_v42, %v4461_v46 }
 0x160   : > { %v855_v43 = vpop.f32.mrf.mxu0  ;;  %v3953_v30 = vadd.f32 %v1044_v13, %v4461_v46 }
 0x161   : > { %v1048_v57 = vpop.f32.mrf.mxu1 }
 0x162   : > { %v857_v6 = vpop.f32.mrf.mxu0 }
 0x163   : > { %v1050_v28 = vpop.f32.mrf.mxu1  ;;  %v858_v42 = vadd.f32 %v857_v6, %v4465_v54 }
 0x164   : > { %v859_v35 = vpop.f32.mrf.mxu0  ;;  %v1051_v41 = vadd.f32 %v1050_v28, %v4465_v54 }
 0x165   : > { %v1052_v16 = vpop.f32.mrf.mxu1  ;;  %v860_v21 = vadd.f32 %v859_v35, %v4462_v11  ;;  %v1180_v10 = vmax.f32 %v858_v42, 0.0  ;;  %v1162_v42 = vmax.f32 %v3923_v50, 0.0 }
 0x166   : > { %v861_v38 = vpop.f32.mrf.mxu0 }
 0x167   : > { %v1054_v27 = vpop.f32.mrf.mxu1  ;;  %v862_v62 = vadd.f32 %v861_v38, %v4462_v11  ;;  %v1183_v51 = vmax.f32 %v860_v21, 0.0  ;;  %v840_v21 = vadd.f32 %v3889_v8, %v4459_v14 }
 0x168   : > { %v865_v56 = vpop.f32.mrf.mxu0  ;;  %v1055_v39 = vadd.f32 %v1054_v27, %v4462_v11 }
 0x169   : > { %v1058_v15 = vpop.f32.mrf.mxu1  ;;  %v866_v46 = vadd.f32 %v865_v56, %v4463_v44  ;;  %v1184_v47 = vmax.f32 %v862_v62, 0.0 }
 0x16a   : > { %v867_v63 = vpop.f32.mrf.mxu0  ;;  %v1059_v13 = vadd.f32 %v1058_v15, %v4463_v44  ;;  %v856_v15 = vadd.f32 %v855_v43, %v4465_v54  ;;  %v846_v43 = vadd.f32 %v3893_v34, %v4460_v33  ;;  %v1175_v34 = vmax.f32 %v3944_v4, 0.0 }
 0x16b   : > { %v1060_v49 = vpop.f32.mrf.mxu1  ;;  %v868_v60 = vadd.f32 %v867_v63, %v4463_v44  ;;  %v1053_v63 = vadd.f32 %v1052_v16, %v4462_v11  ;;  %v1187_v61 = vmax.f32 %v866_v46, 0.0  ;;  %v1182_v11 = vmax.f32 %v1051_v41, 0.0 }
 0x16c   : > { %v869_v40 = vpop.f32.mrf.mxu0  ;;  %v1061_v58 = vadd.f32 %v1060_v49, %v4463_v44  ;;  %v1049_v44 = vadd.f32 %v1048_v57, %v4465_v54  ;;  %v1189_v35 = vmax.f32 %v1059_v13, 0.0  ;;  %v1039_v41 = vadd.f32 %v3895_v32, %v4460_v33 }
 0x16d   : > { %v1062_v45 = vpop.f32.mrf.mxu1  ;;  %v870_v48 = vadd.f32 %v869_v40, %v4464_v18  ;;  %v1188_v24 = vmax.f32 %v868_v60, 0.0  ;;  %v1178_v60 = vmax.f32 %v3953_v30, 0.0  ;;  %v1179_v57 = vmax.f32 %v856_v15, 0.0  ;;  %v4471_v15 = vld [vmem:[#allocation10_spill] sm:$0xff] }
 0x16e   : > { %v1063_v36 = vadd.f32 %v1062_v45, %v4464_v18  ;;  %v871_v38 = vpop.f32.mrf.mxu0  ;;  %v1186_v45 = vmax.f32 %v1055_v39, 0.0  ;;  %v1190_v28 = vmax.f32 %v1061_v58, 0.0  ;;  %v1284_v58 = vpack.c.bf16 %v1184_v47, %v1180_v10 }
 0x16f   : > { %v1064_v27 = vpop.f32.mrf.mxu1  ;;  %v872_v49 = vadd.f32 %v871_v38, %v4464_v18  ;;  %v1191_v9 = vmax.f32 %v870_v48, 0.0  ;;  %v1176_v48 = vmax.f32 %v3950_v5, 0.0  ;;  %v1181_v54 = vmax.f32 %v1049_v44, 0.0 }
 0x170   : > { %v1065_v40 = vadd.f32 %v1064_v27, %v4464_v18  ;;  %v1193_v6 = vmax.f32 %v1063_v36, 0.0  ;;  %v1185_v18 = vmax.f32 %v1053_v63, 0.0  ;;  %v1286_v36 = vpack.c.bf16 %v1186_v45, %v1182_v11  ;;  %v4467_v63 = vld [vmem:[#allocation36_spill] sm:$0xff] }
 0x171   : > { %v1192_v2 = vmax.f32 %v872_v49, 0.0  ;;  %v1287_v62 = vpack.c.bf16 %v1191_v9, %v1187_v61  ;;  %v1172_v10 = vmax.f32 %v3938_v23, 0.0  ;;  %v1174_v47 = vmax.f32 %v3941_v19, 0.0  ;;  %v4468_v49 = vld [vmem:[#allocation11_spill] sm:$0xff] }
 0x172   : > { %v1194_v56 = vmax.f32 %v1065_v40, 0.0  ;;  %v1289_v39 = vpack.c.bf16 %v1193_v6, %v1189_v35  ;;  %v1177_v33 = vmax.f32 %v3947_v26, 0.0  ;;  %v1283_v32 = vpack.c.bf16 %v1183_v51, %v1179_v57  ;;  %v4469_v40 = vld [vmem:[#allocation28_spill] sm:$0xff] }
 0x173   : > { %v1288_v16 = vpack.c.bf16 %v1192_v2, %v1188_v24  ;;  %v1033_v24 = vadd.f32 %v3891_v17, %v4459_v14  ;;  %v1285_v9 = vpack.c.bf16 %v1185_v18, %v1181_v54  ;;  %v1168_v61 = vmax.f32 %v3932_v52, 0.0 }
 0x174   : > { %v1290_v38 = vpack.c.bf16 %v1194_v56, %v1190_v28  ;;  %v1170_v2 = vmax.f32 %v3935_v55, 0.0  ;;  %v1280_v8 = vpack.c.bf16 %v1176_v48, %v1172_v10  ;;  %v1282_v5 = vpack.c.bf16 %v1178_v60, %v1174_v47  ;;  %v4475_v60 = vld [vmem:[#allocation37_spill] sm:$0xff] }
 0x175   : > { %1659 = vmatprep.subr.bf16.mxu0 %v1288_v16  ;;  %v836_v17 = vadd.f32 %v3883_v3, %v4458_v25  ;;  %v1029_v14 = vadd.f32 %v3885_v0, %v4458_v25  ;;  %v1171_v23 = vmax.f32 %v846_v43, 0.0  ;;  %v1173_v19 = vmax.f32 %v1039_v41, 0.0  ;;  %v4472_v16 = vld [vmem:[#allocation38_spill] sm:$0xff] }
 0x176   : > { %1852 = vmatprep.subr.bf16.mxu1 %v1290_v38  ;;  %1660 = vmatpush2.bf16.msra.mxu0 %v1287_v62  ;;  %v830_v51 = vadd.f32 %v3877_v29, %v4457_v53  ;;  %v1023_v52 = vadd.f32 %v3879_v37, %v4457_v53  ;;  %v1164_v55 = vmax.f32 %v3926_v20, 0.0  ;;  %v1166_v4 = vmax.f32 %v3929_v7, 0.0  ;;  %v4466_v7 = vld [vmem:[#allocation40_spill] sm:$0xff]  ;;  %v4473_v38 = vld [vmem:[#allocation45_spill] sm:$0xff] }
 0x177   : > { %1853 = vmatpush2.bf16.msra.mxu1 %v1289_v39  ;;  %1661 = vmatprep.subr.bf16.mxu0 %v1284_v58  ;;  %v1167_v3 = vmax.f32 %v840_v21, 0.0  ;;  %v1169_v26 = vmax.f32 %v1033_v24, 0.0  ;;  %v1279_v30 = vpack.c.bf16 %v1175_v34, %v1171_v23  ;;  %v1281_v0 = vpack.c.bf16 %v1177_v33, %v1173_v19  ;;  %v4483_v23 = vld [vmem:[#allocation41_spill] sm:$0xff]  ;;  %v4484_v19 = vld [vmem:[#allocation42_spill] sm:$0xff] }
 0x178   : > { %1854 = vmatprep.subr.bf16.mxu1 %v1286_v36  ;;  %v1160_v25 = vmax.f32 %v3920_v31, 0.0  ;;  %v1276_v46 = vpack.c.bf16 %v1168_v61, %v1164_v55  ;;  %v1278_v13 = vpack.c.bf16 %v1170_v2, %v1166_v4  ;;  %v826_v29 = vadd.f32 %v3872_v12, %v4454_v22  ;;  %v4476_v36 = vld [vmem:[#allocation33_spill] sm:$0xff]  ;;  %v4478_v61 = vld [vmem:[#allocation50_spill] sm:$0xff]  ;;  %v4479_v2 = vld [vmem:[#allocation47_spill] sm:$0xff] }
 0x179   : > { %v1019_v37 = vadd.f32 %v3874_v59, %v4454_v22  ;;  %v1163_v53 = vmax.f32 %v836_v17, 0.0  ;;  %v1165_v20 = vmax.f32 %v1029_v14, 0.0  ;;  %v820_v27 = vadd.f32 %v4466_v7, %v4451_v1  ;;  %v4470_v22 = vld [vmem:[#allocation34_spill] sm:$0xff]  ;;  %v4482_v17 = vld [vmem:[#allocation44_spill] sm:$0xff] }
 0x17a   : > { %1662 = vmatpush2.bf16.msra.mxu0 %v1283_v32  ;;  %v1013_v31 = vadd.f32 %v4467_v63, %v4451_v1  ;;  %v1156_v50 = vmax.f32 %v4468_v49, 0.0  ;;  %v1158_v45 = vmax.f32 %v4469_v40, 0.0  ;;  %v1159_v12 = vmax.f32 %v830_v51, 0.0  ;;  %v4474_v1 = vld [vmem:[#allocation46_spill] sm:$0xff]  ;;  %v2911_v51 = vld [vmem:[%s4338_s3 + $0x14] ss:$8 sps:$4 sm:$0xff]  }
 0x17b   : > { %1855 = vmatpush2.bf16.msra.mxu1 %v1285_v9  ;;  %1663 = vmatprep.subr.bf16.mxu0 %v1280_v8  ;;  %v1161_v6 = vmax.f32 %v1023_v52, 0.0  ;;  %v1275_v28 = vpack.c.bf16 %v1167_v3, %v1163_v53  ;;  %v1277_v59 = vpack.c.bf16 %v1169_v26, %v1165_v20  ;;  %v1152_v56 = vmax.f32 %v4470_v22, 0.0  ;;  %v4477_v9 = vld [vmem:[#allocation49_spill] sm:$0xff]  ;;  %v4480_v8 = vld [vmem:[#allocation48_spill] sm:$0xff]  ;;  %v2914_v55 = vld [vmem:[%s4338_s3 + $0x24] ss:$8 sps:$4 sm:$0xff]  }
 0x17c   : > { %1856 = vmatprep.subr.bf16.mxu1 %v1282_v5  ;;  %v1154_v44 = vmax.f32 %v4471_v15, 0.0  ;;  %v1272_v35 = vpack.c.bf16 %v1160_v25, %v1156_v50  ;;  %v1274_v11 = vpack.c.bf16 %v1162_v42, %v1158_v45  ;;  %v816_v18 = vadd.f32 %v4473_v38, %v4472_v16  ;;  %v4481_v5 = vld [vmem:[#allocation43_spill] sm:$0xff]  ;;  %v2917_v3 = vld [vmem:[%s4338_s3 + $0x34] ss:$8 sps:$4 sm:$0xff]  }
 0x17d   : > { %v1009_v62 = vadd.f32 %v4474_v1, %v4472_v16  ;;  %v1155_v39 = vmax.f32 %v826_v29, 0.0  ;;  %v1157_v48 = vmax.f32 %v1019_v37, 0.0  ;;  %v1148_v58 = vmax.f32 %v4475_v60, 0.0  ;;  %v2908_v14 = vld [vmem:[%s4338_s3] ss:$8 sps:$4 sm:$0xff]  }
 0x17e   : > { %1664 = vmatpush2.bf16.msra.mxu0 %v1279_v30  ;;  %v1150_v43 = vmax.f32 %v4476_v36, 0.0  ;;  %v1151_v41 = vmax.f32 %v820_v27, 0.0  ;;  %v1153_v57 = vmax.f32 %v1013_v31, 0.0  ;;  %v1147_v47 = vmax.f32 %v816_v18, 0.0  ;;  %v2913_v52 = vld [vmem:[%s4338_s3 + $0x10] ss:$8 sps:$4 sm:$0xff]  }
 0x17f   : > { %1857 = vmatpush2.bf16.msra.mxu1 %v1281_v0  ;;  %1665 = vmatprep.subr.bf16.mxu0 %v1276_v46  ;;  %v1271_v54 = vpack.c.bf16 %v1159_v12, %v1155_v39  ;;  %v1273_v21 = vpack.c.bf16 %v1161_v6, %v1157_v48  ;;  %v1268_v24 = vpack.c.bf16 %v1152_v56, %v1148_v58  ;;  %v1149_v34 = vmax.f32 %v1009_v62, 0.0  ;;  %v2916_v4 = vld [vmem:[%s4338_s3 + $0x20] ss:$8 sps:$4 sm:$0xff]   ;;  %v2919_v26 = vld [vmem:[%s4338_s3 + $0x30] ss:$8 sps:$4 sm:$0xff]   ;;  %v1326_v56 = vpop.permute.xlu0 %1325 }
 0x180   : > { %1858 = vmatprep.subr.bf16.mxu1 %v1278_v13  ;;  %v1270_v10 = vpack.c.bf16 %v1154_v44, %v1150_v43  ;;  %v1267_v33 = vpack.c.bf16 %v1151_v41, %v1147_v47  ;;  %v2920_v30 = vld [vmem:[%s4338_s3 + $0x44] ss:$8 sps:$4 sm:$0xff]   ;;  %v2922_v0 = vld [vmem:[%s4338_s3 + $0x40] ss:$8 sps:$4 sm:$0xff]   ;;  %v2923_v25 = vld [vmem:[%s4338_s3 + $0x54] ss:$8 sps:$4 sm:$0xff]   ;;  %v1331_v44 = vpop.permute.xlu1 %1330 }
 0x181   : > { %v1269_v32 = vpack.c.bf16 %v1153_v57, %v1149_v34  ;;  %v2925_v42 = vld [vmem:[%s4338_s3 + $0x50] ss:$8 sps:$4 sm:$0xff]   ;;  %v2926_v46 = vld [vmem:[%s4338_s3 + $0x64] ss:$8 sps:$4 sm:$0xff]   ;;  %v2928_v13 = vld [vmem:[%s4338_s3 + $0x60] ss:$8 sps:$4 sm:$0xff]  }
 0x182   : > { %1666 = vmatpush2.bf16.msra.mxu0 %v1275_v28  ;;  %v2929_v29 = vld [vmem:[%s4338_s3 + $0x74] ss:$8 sps:$4 sm:$0xff]   ;;  %v2931_v37 = vld [vmem:[%s4338_s3 + $0x70] ss:$8 sps:$4 sm:$0xff]   ;;  %v2932_v53 = vld [vmem:[%s4338_s3 + $0x84] ss:$8 sps:$4 sm:$0xff]  }
 0x183   : > { %1859 = vmatpush2.bf16.msra.mxu1 %v1277_v59  ;;  %1667 = vmatprep.subr.bf16.mxu0 %v1272_v35  ;;  %v2934_v20 = vld [vmem:[%s4338_s3 + $0x80] ss:$8 sps:$4 sm:$0xff]   ;;  %v2935_v7 = vld [vmem:[%s4338_s3 + $0x94] ss:$8 sps:$4 sm:$0xff]   ;;  %v2937_v27 = vld [vmem:[%s4338_s3 + $0x90] ss:$8 sps:$4 sm:$0xff]   ;;  %v4118_v35 = vpop.permute.xlu0 %1335 }
 0x184   : > { %1860 = vmatprep.subr.bf16.mxu1 %v1274_v11  ;;  %v2938_v63 = vld [vmem:[%s4338_s3 + $0xa4] ss:$8 sps:$4 sm:$0xff]   ;;  %v2940_v31 = vld [vmem:[%s4338_s3 + $0xa0] ss:$8 sps:$4 sm:$0xff]   ;;  %v2941_v49 = vld [vmem:[%s4338_s3 + $0xb4] ss:$8 sps:$4 sm:$0xff]   ;;  %v4120_v11 = vpop.permute.xlu1 %1340 }
 0x185   : > { %v2943_v50 = vld [vmem:[%s4338_s3 + $0xb0] ss:$8 sps:$4 sm:$0xff]   ;;  %v2946_v40 = vld [vmem:[%s4338_s3 + $0xc4] ss:$8 sps:$4 sm:$0xff]   ;;  %v2944_v45 = vld [vmem:[%s4338_s3 + $0xc0] ss:$8 sps:$4 sm:$0xff]  }
 0x186   : > { %1668 = vmatpush2.bf16.msra.mxu0 %v1271_v54  ;;  %v2949_v12 = vld [vmem:[%s4338_s3 + $0xd4] ss:$8 sps:$4 sm:$0xff]   ;;  %v2947_v6 = vld [vmem:[%s4338_s3 + $0xd0] ss:$8 sps:$4 sm:$0xff]   ;;  %v2952_v28 = vld [vmem:[%s4338_s3 + $0xe4] ss:$8 sps:$4 sm:$0xff]  }
 0x187   : > { %1861 = vmatpush2.bf16.msra.mxu1 %v1273_v21  ;;  %1669 = vmatprep.subr.bf16.mxu0 %v1268_v24  ;;  %v2950_v59 = vld [vmem:[%s4338_s3 + $0xe0] ss:$8 sps:$4 sm:$0xff]   ;;  %v2955_v22 = vld [vmem:[%s4338_s3 + $0xf4] ss:$8 sps:$4 sm:$0xff]   ;;  %v2953_v15 = vld [vmem:[%s4338_s3 + $0xf0] ss:$8 sps:$4 sm:$0xff]   ;;  %v4122_v16 = vpop.permute.xlu0 %1345 }
 0x188   : > { %1862 = vmatprep.subr.bf16.mxu1 %v1270_v10  ;;  %v4124_v38 = vpop.permute.xlu1 %1350 }
 0x18a   : > { %1670 = vmatpush2.bf16.msra.mxu0 %v1267_v33 }
 0x18b   : > { %1863 = vmatpush2.bf16.msra.mxu1 %v1269_v32  ;;  %1671 = vmatprep.subr.bf16.mxu0 %v4477_v9  ;;  %v4126_v18 = vpop.permute.xlu0 %1355 }
 0x18c   : > { %1864 = vmatprep.subr.bf16.mxu1 %v4478_v61  ;;  %v4128_v1 = vpop.permute.xlu1 %1360 }
 0x18e   : > { %1672 = vmatpush2.bf16.msra.mxu0 %v4479_v2 }
 0x18f   : > { %1865 = vmatpush2.bf16.msra.mxu1 %v4480_v8  ;;  %1673 = vmatprep.subr.bf16.mxu0 %v4481_v5  ;;  %v4130_v62 = vpop.permute.xlu0 %1365 }
 0x190   : > { %1866 = vmatprep.subr.bf16.mxu1 %v4482_v17  ;;  %v4132_v39 = vpop.permute.xlu1 %1370 }
 0x192   : > { %1674 = vmatpush2.bf16.msra.mxu0 %v4483_v23 }
 0x193   : > { %1867 = vmatpush2.bf16.msra.mxu1 %v4484_v19  ;;  %v4134_v48 = vpop.permute.xlu0 %1375 }
 0x194   : > { %v4136_v60 = vpop.permute.xlu1 %1380 }
 0x195   : > { %1676 = vmatmul.mubr.bf16.vlgmr.msra.gmra.mxu0 %v2908_v14 }
 0x196   : > { %1869 = vmatmul.mubr.bf16.vlgmr.msra.gmra.mxu1 %v2908_v14  ;;  %1685 = vmatprep.mubr.bf16.mxu0 %v2911_v51 }
 0x197   : > { %1878 = vmatprep.mubr.bf16.mxu1 %v2911_v51  ;;  %v4138_v58 = vpop.permute.xlu0 %1385 }
 0x198   : > { %v4140_v36 = vpop.permute.xlu1 %1390 }
 0x19b   : > { %v4142_v43 = vpop.permute.xlu0 %1395 }
 0x19c   : > { %v4144_v41 = vpop.permute.xlu1 %1400 }
 0x19d   : > { %1686 = vmatmul.mubr.bf16.gmra.mxu0 %v2913_v52 }
 0x19e   : > { %1879 = vmatmul.mubr.bf16.gmra.mxu1 %v2913_v52  ;;  %1695 = vmatprep.mubr.bf16.mxu0 %v2914_v55 }
 0x19f   : > { %1888 = vmatprep.mubr.bf16.mxu1 %v2914_v55  ;;  %v4146_v57 = vpop.permute.xlu0 %1405 }
 0x1a0   : > { %v4148_v54 = vpop.permute.xlu1 %1410 }
 0x1a3   : > { %v4150_v21 = vpop.permute.xlu0 %1415 }
 0x1a4   : > { %v4152_v24 = vpop.permute.xlu1 %1420 }
 0x1a5   : > { %1696 = vmatmul.mubr.bf16.gmra.mxu0 %v2916_v4 }
 0x1a6   : > { %1889 = vmatmul.mubr.bf16.gmra.mxu1 %v2916_v4  ;;  %1705 = vmatprep.mubr.bf16.mxu0 %v2917_v3 }
 0x1a7   : > { %1898 = vmatprep.mubr.bf16.mxu1 %v2917_v3  ;;  %v4154_v10 = vpop.permute.xlu0 %1425 }
 0x1a8   : > { %v4156_v47 = vpop.permute.xlu1 %1430 }
 0x1ab   : > { %v4158_v34 = vpop.permute.xlu0 %1435 }
 0x1ac   : > { %v4160_v33 = vpop.permute.xlu1 %1440 }
 0x1ad   : > { %1706 = vmatmul.mubr.bf16.gmra.mxu0 %v2919_v26 }
 0x1ae   : > { %1899 = vmatmul.mubr.bf16.gmra.mxu1 %v2919_v26  ;;  %1715 = vmatprep.mubr.bf16.mxu0 %v2920_v30 }
 0x1af   : > { %1908 = vmatprep.mubr.bf16.mxu1 %v2920_v30  ;;  %v4162_v32 = vpop.permute.xlu0 %1445 }
 0x1b0   : > { %v4164_v9 = vpop.permute.xlu1 %1450 }
 0x1b3   : > { %v4166_v61 = vpop.permute.xlu0 %1455 }
 0x1b4   : > { %v4168_v19 = vpop.permute.xlu1 %1460 }
 0x1b5   : > { %1716 = vmatmul.mubr.bf16.gmra.mxu0 %v2922_v0 }
 0x1b6   : > { %1909 = vmatmul.mubr.bf16.gmra.mxu1 %v2922_v0  ;;  %1725 = vmatprep.mubr.bf16.mxu0 %v2923_v25 }
 0x1b7   : > { %1918 = vmatprep.mubr.bf16.mxu1 %v2923_v25  ;;  %v2192_v3 = vpop.permute.xlu0 %2191 }
 0x1bd   : > { %1726 = vmatmul.mubr.bf16.gmra.mxu0 %v2925_v42 }
 0x1be   : > { %1919 = vmatmul.mubr.bf16.gmra.mxu1 %v2925_v42  ;;  %1735 = vmatprep.mubr.bf16.mxu0 %v2926_v46 }
 0x1bf   : > { %1928 = vmatprep.mubr.bf16.mxu1 %v2926_v46 }
 0x1c5   : > { %1736 = vmatmul.mubr.bf16.gmra.mxu0 %v2928_v13 }
 0x1c6   : > { %1929 = vmatmul.mubr.bf16.gmra.mxu1 %v2928_v13  ;;  %1745 = vmatprep.mubr.bf16.mxu0 %v2929_v29 }
 0x1c7   : > { %1938 = vmatprep.mubr.bf16.mxu1 %v2929_v29 }
 0x1cd   : > { %1746 = vmatmul.mubr.bf16.gmra.mxu0 %v2931_v37 }
 0x1ce   : > { %1939 = vmatmul.mubr.bf16.gmra.mxu1 %v2931_v37  ;;  %1755 = vmatprep.mubr.bf16.mxu0 %v2932_v53 }
 0x1cf   : > { %1948 = vmatprep.mubr.bf16.mxu1 %v2932_v53 }
 0x1d5   : > { %1756 = vmatmul.mubr.bf16.gmra.mxu0 %v2934_v20 }
 0x1d6   : > { %1949 = vmatmul.mubr.bf16.gmra.mxu1 %v2934_v20  ;;  %1765 = vmatprep.mubr.bf16.mxu0 %v2935_v7 }
 0x1d7   : > { %1958 = vmatprep.mubr.bf16.mxu1 %v2935_v7 }
 0x1dd   : > { %1766 = vmatmul.mubr.bf16.gmra.mxu0 %v2937_v27 }
 0x1de   : > { %1959 = vmatmul.mubr.bf16.gmra.mxu1 %v2937_v27  ;;  %1775 = vmatprep.mubr.bf16.mxu0 %v2938_v63 }
 0x1df   : > { %1968 = vmatprep.mubr.bf16.mxu1 %v2938_v63 }
 0x1e5   : > { %1776 = vmatmul.mubr.bf16.gmra.mxu0 %v2940_v31 }
 0x1e6   : > { %1969 = vmatmul.mubr.bf16.gmra.mxu1 %v2940_v31  ;;  %1785 = vmatprep.mubr.bf16.mxu0 %v2941_v49  ;;  %v2197_v31 = vpop.permute.xlu1 %2196 }
 0x1e7   : > { %1978 = vmatprep.mubr.bf16.mxu1 %v2941_v49 }
 0x1ed   : > { %1786 = vmatmul.mubr.bf16.gmra.mxu0 %v2943_v50 }
 0x1ee   : > { %1979 = vmatmul.mubr.bf16.gmra.mxu1 %v2943_v50  ;;  %1795 = vmatprep.mubr.bf16.mxu0 %v2946_v40 }
 0x1ef   : > { %1988 = vmatprep.mubr.bf16.mxu1 %v2946_v40 }
 0x1f5   : > { %1796 = vmatmul.mubr.bf16.gmra.mxu0 %v2944_v45 }
 0x1f6   : > { %1989 = vmatmul.mubr.bf16.gmra.mxu1 %v2944_v45  ;;  %1805 = vmatprep.mubr.bf16.mxu0 %v2949_v12 }
 0x1f7   : > { %1998 = vmatprep.mubr.bf16.mxu1 %v2949_v12 }
 0x1fd   : > { %1806 = vmatmul.mubr.bf16.gmra.mxu0 %v2947_v6 }
 0x1fe   : > { %1999 = vmatmul.mubr.bf16.gmra.mxu1 %v2947_v6  ;;  %1815 = vmatprep.mubr.bf16.mxu0 %v2952_v28 }
 0x1ff   : > { %2008 = vmatprep.mubr.bf16.mxu1 %v2952_v28 }
 0x205   : > { %1816 = vmatmul.mubr.bf16.gmra.mxu0 %v2950_v59 }
 0x206   : > { %2009 = vmatmul.mubr.bf16.gmra.mxu1 %v2950_v59  ;;  %1825 = vmatprep.mubr.bf16.mxu0 %v2955_v22 }
 0x207   : > { %2018 = vmatprep.mubr.bf16.mxu1 %v2955_v22  ;;  %v2202_v22 = vpop.permute.xlu0 %2201 }
 0x20d   : > { %1826 = vmatmul.mubr.bf16.gmra.mxu0 %v2953_v15 }
 0x20e   : > { %2019 = vmatmul.mubr.bf16.gmra.mxu1 %v2953_v15 }
 0x255   : > { %v1677_v2 = vpop.f32.mrf.mxu0 }
 0x256   : > { %v1870_v8 = vpop.f32.mrf.mxu1  ;;  %v1678_v5 = vadd.f32 %v1677_v2, %v1326_v56 }
 0x257   : > { %v1871_v17 = vadd.f32 %v1870_v8, %v1326_v56  ;;  %v1679_v14 = vpop.f32.mrf.mxu0 }
 0x258   : > { %v1872_v23 = vpop.f32.mrf.mxu1  ;;  %v1680_v51 = vadd.f32 %v1679_v14, %v1326_v56  ;;  %v2029_v26 = vmax.f32 %v1678_v5, 0.0 }
 0x259   : > { %v1873_v52 = vadd.f32 %v1872_v23, %v1326_v56  ;;  %v1681_v55 = vpop.f32.mrf.mxu0  ;;  %v2031_v30 = vmax.f32 %v1871_v17, 0.0 }
 0x25a   : > { %v1874_v4 = vpop.f32.mrf.mxu1  ;;  %v1682_v0 = vadd.f32 %v1681_v55, %v1331_v44  ;;  %v2030_v37 = vmax.f32 %v1680_v51, 0.0  ;;  %v2349_v12 = vmul.f32 %v2192_v3, %v2029_v26 }
 0x25b   : > { %v1875_v25 = vadd.f32 %v1874_v4, %v1331_v44  ;;  %v1683_v42 = vpop.f32.mrf.mxu0  ;;  %v2032_v53 = vmax.f32 %v1873_v52, 0.0  ;;  %v2351_v6 = vmul.f32 %v2192_v3, %v2031_v30 }
 0x25c   : > { %v1876_v46 = vpop.f32.mrf.mxu1  ;;  %v1684_v13 = vadd.f32 %v1683_v42, %v1331_v44  ;;  %v2033_v20 = vmax.f32 %v1682_v0, 0.0  ;;  %v2350_v8 = vmul.f32 %v2192_v3, %v2030_v37 }
 0x25d   : > { %v1877_v29 = vadd.f32 %v1876_v46, %v1331_v44  ;;  %v2035_v7 = vmax.f32 %v1875_v25, 0.0  ;;  %v1687_v27 = vpop.f32.mrf.mxu0  ;;  %v2352_v5 = vmul.f32 %v2192_v3, %v2032_v53 }
 0x25e   : > { %v1880_v63 = vpop.f32.mrf.mxu1  ;;  %v2034_v49 = vmax.f32 %v1684_v13, 0.0  ;;  %v1688_v40 = vadd.f32 %v1687_v27, %v4118_v35  ;;  %v2353_v56 = vmul.f32 %v2197_v31, %v2033_v20 }
 0x25f   : > { %v2036_v50 = vmax.f32 %v1877_v29, 0.0  ;;  %v1881_v45 = vadd.f32 %v1880_v63, %v4118_v35  ;;  %v1689_v28 = vpop.f32.mrf.mxu0  ;;  %v2355_v15 = vmul.f32 %v2197_v31, %v2035_v7 }
 0x260   : > { %v1882_v59 = vpop.f32.mrf.mxu1  ;;  %v2037_v44 = vmax.f32 %v1688_v40, 0.0  ;;  %v1690_v17 = vadd.f32 %v1689_v28, %v4118_v35  ;;  %v2354_v52 = vmul.f32 %v2197_v31, %v2034_v49  ;;  %v2477_v29 = vadd.f32 %v2353_v56, %v2349_v12  ;;  %v2207_v49 = vpop.permute.xlu1 %2206 }
 0x261   : > { %v2039_v2 = vmax.f32 %v1881_v45, 0.0  ;;  %v1883_v14 = vadd.f32 %v1882_v59, %v4118_v35  ;;  %v1691_v23 = vpop.f32.mrf.mxu0  ;;  %v2356_v55 = vmul.f32 %v2197_v31, %v2036_v50  ;;  %v2551_v3 = vadd.f32 %v2355_v15, %v2351_v6 }
 0x262   : > { %v1884_v51 = vpop.f32.mrf.mxu1  ;;  %v2357_v4 = vmul.f32 %v2202_v22, %v2037_v44  ;;  %v2038_v30 = vmax.f32 %v1690_v17, 0.0  ;;  %v1692_v25 = vadd.f32 %v1691_v23, %v4120_v11  ;;  %v2514_v59 = vadd.f32 %v2354_v52, %v2350_v8 }
 0x263   : > { %v2359_v26 = vmul.f32 %v2202_v22, %v2039_v2  ;;  %v2040_v0 = vmax.f32 %v1883_v14, 0.0  ;;  %v1885_v42 = vadd.f32 %v1884_v51, %v4120_v11  ;;  %v1693_v46 = vpop.f32.mrf.mxu0  ;;  %v2588_v12 = vadd.f32 %v2356_v55, %v2352_v5 }
 0x264   : > { %v1886_v13 = vpop.f32.mrf.mxu1  ;;  %v1694_v37 = vadd.f32 %v1693_v46, %v4120_v11  ;;  %v2358_v53 = vmul.f32 %v2202_v22, %v2038_v30  ;;  %v2041_v7 = vmax.f32 %v1692_v25, 0.0  ;;  %v2478_v6 = vadd.f32 %v2477_v29, %v2357_v4 }
 0x265   : > { %v1887_v35 = vadd.f32 %v1886_v13, %v4120_v11  ;;  %v2360_v20 = vmul.f32 %v2202_v22, %v2040_v0  ;;  %v2043_v27 = vmax.f32 %v1885_v42, 0.0  ;;  %v1697_v63 = vpop.f32.mrf.mxu0  ;;  %v2552_v56 = vadd.f32 %v2551_v3, %v2359_v26  ;;  %v2212_v11 = vpop.permute.xlu0 %2211 }
 0x266   : > { %v1890_v31 = vpop.f32.mrf.mxu1  ;;  %v2042_v50 = vmax.f32 %v1694_v37, 0.0  ;;  %v1698_v45 = vadd.f32 %v1697_v63, %v4122_v16  ;;  %v2361_v2 = vmul.f32 %v2207_v49, %v2041_v7  ;;  %v2515_v23 = vadd.f32 %v2514_v59, %v2358_v53 }
 0x267   : > { %v2044_v40 = vmax.f32 %v1887_v35, 0.0  ;;  %v1891_v28 = vadd.f32 %v1890_v31, %v4122_v16  ;;  %v1699_v15 = vpop.f32.mrf.mxu0  ;;  %v2363_v22 = vmul.f32 %v2207_v49, %v2043_v27  ;;  %v2589_v51 = vadd.f32 %v2588_v12, %v2360_v20 }
 0x268   : > { %v1892_v44 = vpop.f32.mrf.mxu1  ;;  %v2045_v17 = vmax.f32 %v1698_v45, 0.0  ;;  %v1700_v30 = vadd.f32 %v1699_v15, %v4122_v16  ;;  %v2362_v46 = vmul.f32 %v2207_v49, %v2042_v50  ;;  %v2479_v37 = vadd.f32 %v2478_v6, %v2361_v2  ;;  %v2217_v50 = vpop.permute.xlu1 %2216 }
 0x269   : > { %v2047_v14 = vmax.f32 %v1891_v28, 0.0  ;;  %v1893_v0 = vadd.f32 %v1892_v44, %v4122_v16  ;;  %v1701_v25 = vpop.f32.mrf.mxu0  ;;  %v2364_v8 = vmul.f32 %v2207_v49, %v2044_v40  ;;  %v2553_v35 = vadd.f32 %v2552_v56, %v2363_v22 }
 0x26a   : > { %v1894_v42 = vpop.f32.mrf.mxu1  ;;  %v2365_v5 = vmul.f32 %v2212_v11, %v2045_v17  ;;  %v2046_v55 = vmax.f32 %v1700_v30, 0.0  ;;  %v1702_v26 = vadd.f32 %v1701_v25, %v4124_v38  ;;  %v2516_v12 = vadd.f32 %v2515_v23, %v2362_v46 }
 0x26b   : > { %v2367_v52 = vmul.f32 %v2212_v11, %v2047_v14  ;;  %v2048_v4 = vmax.f32 %v1893_v0, 0.0  ;;  %v1895_v13 = vadd.f32 %v1894_v42, %v4124_v38  ;;  %v1703_v29 = vpop.f32.mrf.mxu0  ;;  %v2590_v6 = vadd.f32 %v2589_v51, %v2364_v8 }
 0x26c   : > { %v1896_v3 = vpop.f32.mrf.mxu1  ;;  %v1704_v53 = vadd.f32 %v1703_v29, %v4124_v38  ;;  %v2366_v20 = vmul.f32 %v2212_v11, %v2046_v55  ;;  %v2049_v27 = vmax.f32 %v1702_v26, 0.0  ;;  %v2480_v56 = vadd.f32 %v2479_v37, %v2365_v5 }
 0x26d   : > { %v1897_v16 = vadd.f32 %v1896_v3, %v4124_v38  ;;  %v2368_v7 = vmul.f32 %v2212_v11, %v2048_v4  ;;  %v2051_v63 = vmax.f32 %v1895_v13, 0.0  ;;  %v1707_v31 = vpop.f32.mrf.mxu0  ;;  %v2554_v15 = vadd.f32 %v2553_v35, %v2367_v52  ;;  %v2222_v38 = vpop.permute.xlu0 %2221 }
 0x26e   : > { %v1900_v49 = vpop.f32.mrf.mxu1  ;;  %v2050_v40 = vmax.f32 %v1704_v53, 0.0  ;;  %v1708_v28 = vadd.f32 %v1707_v31, %v4126_v18  ;;  %v2369_v22 = vmul.f32 %v2217_v50, %v2049_v27  ;;  %v2517_v30 = vadd.f32 %v2516_v12, %v2366_v20 }
 0x26f   : > { %v2052_v45 = vmax.f32 %v1897_v16, 0.0  ;;  %v1901_v59 = vadd.f32 %v1900_v49, %v4126_v18  ;;  %v1709_v44 = vpop.f32.mrf.mxu0  ;;  %v2371_v11 = vmul.f32 %v2217_v50, %v2051_v63  ;;  %v2591_v0 = vadd.f32 %v2590_v6, %v2368_v7  ;;  %v2227_v49 = vpop.permute.xlu1 %2226 }
 0x270   : > { %v1902_v2 = vpop.f32.mrf.mxu1  ;;  %v2053_v17 = vmax.f32 %v1708_v28, 0.0  ;;  %v1710_v25 = vadd.f32 %v1709_v44, %v4126_v18  ;;  %v2370_v26 = vmul.f32 %v2217_v50, %v2050_v40  ;;  %v2481_v37 = vadd.f32 %v2480_v56, %v2369_v22 }
 0x271   : > { %v2055_v14 = vmax.f32 %v1901_v59, 0.0  ;;  %v1903_v42 = vadd.f32 %v1902_v2, %v4126_v18  ;;  %v1711_v55 = vpop.f32.mrf.mxu0  ;;  %v2372_v23 = vmul.f32 %v2217_v50, %v2052_v45  ;;  %v2555_v35 = vadd.f32 %v2554_v15, %v2371_v11 }
 0x272   : > { %v1904_v4 = vpop.f32.mrf.mxu1  ;;  %v2373_v51 = vmul.f32 %v2222_v38, %v2053_v17  ;;  %v2054_v8 = vmax.f32 %v1710_v25, 0.0  ;;  %v1712_v52 = vadd.f32 %v1711_v55, %v4128_v1  ;;  %v2518_v59 = vadd.f32 %v2517_v30, %v2370_v26 }
 0x273   : > { %v2375_v46 = vmul.f32 %v2222_v38, %v2055_v14  ;;  %v2056_v5 = vmax.f32 %v1903_v42, 0.0  ;;  %v1905_v13 = vadd.f32 %v1904_v4, %v4128_v1  ;;  %v1713_v29 = vpop.f32.mrf.mxu0  ;;  %v2592_v12 = vadd.f32 %v2591_v0, %v2372_v23 }
 0x274   : > { %v1906_v3 = vpop.f32.mrf.mxu1  ;;  %v1714_v53 = vadd.f32 %v1713_v29, %v4128_v1  ;;  %v2374_v16 = vmul.f32 %v2222_v38, %v2054_v8  ;;  %v2057_v7 = vmax.f32 %v1712_v52, 0.0  ;;  %v2482_v6 = vadd.f32 %v2481_v37, %v2373_v51 }
 0x275   : > { %v1907_v18 = vadd.f32 %v1906_v3, %v4128_v1  ;;  %v2376_v20 = vmul.f32 %v2222_v38, %v2056_v5  ;;  %v2059_v27 = vmax.f32 %v1905_v13, 0.0  ;;  %v1717_v63 = vpop.f32.mrf.mxu0  ;;  %v2556_v56 = vadd.f32 %v2555_v35, %v2375_v46  ;;  %v2232_v1 = vpop.permute.xlu0 %2231 }
 0x276   : > { %v1910_v31 = vpop.f32.mrf.mxu1  ;;  %v2058_v50 = vmax.f32 %v1714_v53, 0.0  ;;  %v1718_v45 = vadd.f32 %v1717_v63, %v4130_v62  ;;  %v2377_v2 = vmul.f32 %v2227_v49, %v2057_v7  ;;  %v2519_v17 = vadd.f32 %v2518_v59, %v2374_v16 }
 0x277   : > { %v2060_v40 = vmax.f32 %v1907_v18, 0.0  ;;  %v1911_v28 = vadd.f32 %v1910_v31, %v4130_v62  ;;  %v1719_v15 = vpop.f32.mrf.mxu0  ;;  %v2379_v38 = vmul.f32 %v2227_v49, %v2059_v27  ;;  %v2593_v14 = vadd.f32 %v2592_v12, %v2376_v20  ;;  %v2237_v27 = vpop.permute.xlu1 %2236 }
 0x278   : > { %v1912_v44 = vpop.f32.mrf.mxu1  ;;  %v2061_v22 = vmax.f32 %v1718_v45, 0.0  ;;  %v1720_v25 = vadd.f32 %v1719_v15, %v4130_v62  ;;  %v2378_v8 = vmul.f32 %v2227_v49, %v2058_v50  ;;  %v2483_v29 = vadd.f32 %v2482_v6, %v2377_v2 }
 0x279   : > { %v2063_v11 = vmax.f32 %v1911_v28, 0.0  ;;  %v1913_v42 = vadd.f32 %v1912_v44, %v4130_v62  ;;  %v1721_v55 = vpop.f32.mrf.mxu0  ;;  %v2380_v30 = vmul.f32 %v2227_v49, %v2060_v40  ;;  %v2557_v3 = vadd.f32 %v2556_v56, %v2379_v38 }
 0x27a   : > { %v1914_v4 = vpop.f32.mrf.mxu1  ;;  %v2381_v0 = vmul.f32 %v2232_v1, %v2061_v22  ;;  %v2062_v23 = vmax.f32 %v1720_v25, 0.0  ;;  %v1722_v46 = vadd.f32 %v1721_v55, %v4132_v39  ;;  %v2520_v40 = vadd.f32 %v2519_v17, %v2378_v8 }
 0x27b   : > { %v2383_v26 = vmul.f32 %v2232_v1, %v2063_v11  ;;  %v2064_v51 = vmax.f32 %v1913_v42, 0.0  ;;  %v1915_v5 = vadd.f32 %v1914_v4, %v4132_v39  ;;  %v1723_v52 = vpop.f32.mrf.mxu0  ;;  %v2594_v45 = vadd.f32 %v2593_v14, %v2380_v30 }
 0x27c   : > { %v1916_v13 = vpop.f32.mrf.mxu1  ;;  %v1724_v37 = vadd.f32 %v1723_v52, %v4132_v39  ;;  %v2382_v35 = vmul.f32 %v2232_v1, %v2062_v23  ;;  %v2065_v18 = vmax.f32 %v1722_v46, 0.0  ;;  %v2484_v28 = vadd.f32 %v2483_v29, %v2381_v0 }
 0x27d   : > { %v1917_v62 = vadd.f32 %v1916_v13, %v4132_v39  ;;  %v2384_v53 = vmul.f32 %v2232_v1, %v2064_v51  ;;  %v2067_v16 = vmax.f32 %v1915_v5, 0.0  ;;  %v1727_v20 = vpop.f32.mrf.mxu0  ;;  %v2558_v59 = vadd.f32 %v2557_v3, %v2383_v26  ;;  %v2242_v39 = vpop.permute.xlu0 %2241 }
 0x27e   : > { %v1920_v7 = vpop.f32.mrf.mxu1  ;;  %v2066_v63 = vmax.f32 %v1724_v37, 0.0  ;;  %v1728_v49 = vadd.f32 %v1727_v20, %v4134_v48  ;;  %v2385_v56 = vmul.f32 %v2237_v27, %v2065_v18  ;;  %v2521_v2 = vadd.f32 %v2520_v40, %v2382_v35 }
 0x27f   : > { %v2068_v31 = vmax.f32 %v1917_v62, 0.0  ;;  %v1921_v50 = vadd.f32 %v1920_v7, %v4134_v48  ;;  %v1729_v12 = vpop.f32.mrf.mxu0  ;;  %v2387_v15 = vmul.f32 %v2237_v27, %v2067_v16  ;;  %v2595_v38 = vadd.f32 %v2594_v45, %v2384_v53  ;;  %v2247_v53 = vpop.permute.xlu1 %2246 }
 0x280   : > { %v1922_v6 = vpop.f32.mrf.mxu1  ;;  %v2069_v44 = vmax.f32 %v1728_v49, 0.0  ;;  %v1730_v22 = vadd.f32 %v1729_v12, %v4134_v48  ;;  %v2386_v55 = vmul.f32 %v2237_v27, %v2066_v63  ;;  %v2485_v46 = vadd.f32 %v2484_v28, %v2385_v56 }
 0x281   : > { %v2071_v1 = vmax.f32 %v1921_v50, 0.0  ;;  %v1923_v11 = vadd.f32 %v1922_v6, %v4134_v48  ;;  %v1731_v25 = vpop.f32.mrf.mxu0  ;;  %v2388_v17 = vmul.f32 %v2237_v27, %v2068_v31  ;;  %v2559_v5 = vadd.f32 %v2558_v59, %v2387_v15 }
 0x282   : > { %v1924_v42 = vpop.f32.mrf.mxu1  ;;  %v2389_v14 = vmul.f32 %v2242_v39, %v2069_v44  ;;  %v2070_v8 = vmax.f32 %v1730_v22, 0.0  ;;  %v1732_v0 = vadd.f32 %v1731_v25, %v4136_v60  ;;  %v2522_v27 = vadd.f32 %v2521_v2, %v2386_v55 }
 0x283   : > { %v2391_v4 = vmul.f32 %v2242_v39, %v2071_v1  ;;  %v2072_v30 = vmax.f32 %v1923_v11, 0.0  ;;  %v1925_v26 = vadd.f32 %v1924_v42, %v4136_v60  ;;  %v1733_v23 = vpop.f32.mrf.mxu0  ;;  %v2596_v63 = vadd.f32 %v2595_v38, %v2388_v17 }
 0x284   : > { %v1926_v51 = vpop.f32.mrf.mxu1  ;;  %v1734_v52 = vadd.f32 %v1733_v23, %v4136_v60  ;;  %v2390_v13 = vmul.f32 %v2242_v39, %v2070_v8  ;;  %v2073_v3 = vmax.f32 %v1732_v0, 0.0  ;;  %v2486_v31 = vadd.f32 %v2485_v46, %v2389_v14 }
 0x285   : > { %v1927_v48 = vadd.f32 %v1926_v51, %v4136_v60  ;;  %v2392_v29 = vmul.f32 %v2242_v39, %v2072_v30  ;;  %v2075_v37 = vmax.f32 %v1925_v26, 0.0  ;;  %v1737_v62 = vpop.f32.mrf.mxu0  ;;  %v2560_v49 = vadd.f32 %v2559_v5, %v2391_v4  ;;  %v2252_v60 = vpop.permute.xlu0 %2251 }
 0x286   : > { %v1930_v35 = vpop.f32.mrf.mxu1  ;;  %v2074_v18 = vmax.f32 %v1734_v52, 0.0  ;;  %v1738_v20 = vadd.f32 %v1737_v62, %v4138_v58  ;;  %v2393_v45 = vmul.f32 %v2247_v53, %v2073_v3  ;;  %v2523_v6 = vadd.f32 %v2522_v27, %v2390_v13 }
 0x287   : > { %v2076_v16 = vmax.f32 %v1927_v48, 0.0  ;;  %v1931_v7 = vadd.f32 %v1930_v35, %v4138_v58  ;;  %v1739_v50 = vpop.f32.mrf.mxu0  ;;  %v2395_v28 = vmul.f32 %v2247_v53, %v2075_v37  ;;  %v2597_v39 = vadd.f32 %v2596_v63, %v2392_v29  ;;  %v2257_v48 = vpop.permute.xlu1 %2256 }
 0x288   : > { %v1932_v40 = vpop.f32.mrf.mxu1  ;;  %v2077_v59 = vmax.f32 %v1738_v20, 0.0  ;;  %v1740_v56 = vadd.f32 %v1739_v50, %v4138_v58  ;;  %v2394_v22 = vmul.f32 %v2247_v53, %v2074_v18  ;;  %v2487_v8 = vadd.f32 %v2486_v31, %v2393_v45 }
 0x289   : > { %v2079_v12 = vmax.f32 %v1931_v7, 0.0  ;;  %v1933_v15 = vadd.f32 %v1932_v40, %v4138_v58  ;;  %v1741_v44 = vpop.f32.mrf.mxu0  ;;  %v2396_v2 = vmul.f32 %v2247_v53, %v2076_v16  ;;  %v2561_v30 = vadd.f32 %v2560_v49, %v2395_v28 }
 0x28a   : > { %v1934_v1 = vpop.f32.mrf.mxu1  ;;  %v2397_v38 = vmul.f32 %v2252_v60, %v2077_v59  ;;  %v2078_v25 = vmax.f32 %v1740_v56, 0.0  ;;  %v1742_v55 = vadd.f32 %v1741_v44, %v4140_v36  ;;  %v2524_v62 = vadd.f32 %v2523_v6, %v2394_v22 }
 0x28b   : > { %v2399_v11 = vmul.f32 %v2252_v60, %v2079_v12  ;;  %v2080_v42 = vmax.f32 %v1933_v15, 0.0  ;;  %v1935_v17 = vadd.f32 %v1934_v1, %v4140_v36  ;;  %v1743_v14 = vpop.f32.mrf.mxu0  ;;  %v2598_v35 = vadd.f32 %v2597_v39, %v2396_v2 }
 0x28c   : > { %v1936_v4 = vpop.f32.mrf.mxu1  ;;  %v1744_v0 = vadd.f32 %v1743_v14, %v4140_v36  ;;  %v2398_v26 = vmul.f32 %v2252_v60, %v2078_v25  ;;  %v2081_v51 = vmax.f32 %v1742_v55, 0.0  ;;  %v2488_v53 = vadd.f32 %v2487_v8, %v2397_v38 }
 0x28d   : > { %v1937_v58 = vadd.f32 %v1936_v4, %v4140_v36  ;;  %v2400_v23 = vmul.f32 %v2252_v60, %v2080_v42  ;;  %v2083_v46 = vmax.f32 %v1935_v17, 0.0  ;;  %v1747_v5 = vpop.f32.mrf.mxu0  ;;  %v2562_v18 = vadd.f32 %v2561_v30, %v2399_v11  ;;  %v2262_v36 = vpop.permute.xlu0 %2261 }
 0x28e   : > { %v1940_v52 = vpop.f32.mrf.mxu1  ;;  %v2082_v13 = vmax.f32 %v1744_v0, 0.0  ;;  %v1748_v3 = vadd.f32 %v1747_v5, %v4142_v43  ;;  %v2401_v7 = vmul.f32 %v2257_v48, %v2081_v51  ;;  %v2525_v49 = vadd.f32 %v2524_v62, %v2398_v26  ;;  %v2267_v30 = vpop.permute.xlu1 %2266 }
 0x28f   : > { %v2084_v29 = vmax.f32 %v1937_v58, 0.0  ;;  %v1941_v37 = vadd.f32 %v1940_v52, %v4142_v43  ;;  %v1749_v16 = vpop.f32.mrf.mxu0  ;;  %v2403_v27 = vmul.f32 %v2257_v48, %v2083_v46  ;;  %v2599_v50 = vadd.f32 %v2598_v35, %v2400_v23 }
 0x290   : > { %v1942_v20 = vpop.f32.mrf.mxu1  ;;  %v2085_v63 = vmax.f32 %v1748_v3, 0.0  ;;  %v1750_v40 = vadd.f32 %v1749_v16, %v4142_v43  ;;  %v2402_v59 = vmul.f32 %v2257_v48, %v2082_v13  ;;  %v2489_v38 = vadd.f32 %v2488_v53, %v2401_v7 }
 0x291   : > { %v2087_v31 = vmax.f32 %v1941_v37, 0.0  ;;  %v1943_v60 = vadd.f32 %v1942_v20, %v4142_v43  ;;  %v1751_v45 = vpop.f32.mrf.mxu0  ;;  %v2404_v12 = vmul.f32 %v2257_v48, %v2084_v29  ;;  %v2563_v11 = vadd.f32 %v2562_v18, %v2403_v27 }
 0x292   : > { %v1944_v28 = vpop.f32.mrf.mxu1  ;;  %v2405_v6 = vmul.f32 %v2262_v36, %v2085_v63  ;;  %v2086_v56 = vmax.f32 %v1750_v40, 0.0  ;;  %v1752_v44 = vadd.f32 %v1751_v45, %v4144_v41  ;;  %v2526_v51 = vadd.f32 %v2525_v49, %v2402_v59 }
 0x293   : > { %v2407_v39 = vmul.f32 %v2262_v36, %v2087_v31  ;;  %v2088_v15 = vmax.f32 %v1943_v60, 0.0  ;;  %v1945_v1 = vadd.f32 %v1944_v28, %v4144_v41  ;;  %v1753_v22 = vpop.f32.mrf.mxu0  ;;  %v2600_v46 = vadd.f32 %v2599_v50, %v2404_v12 }
 0x294   : > { %v1946_v2 = vpop.f32.mrf.mxu1  ;;  %v1754_v25 = vadd.f32 %v1753_v22, %v4144_v41  ;;  %v2406_v42 = vmul.f32 %v2262_v36, %v2086_v56  ;;  %v2089_v17 = vmax.f32 %v1752_v44, 0.0  ;;  %v2490_v5 = vadd.f32 %v2489_v38, %v2405_v6 }
 0x295   : > { %v1947_v43 = vadd.f32 %v1946_v2, %v4144_v41  ;;  %v2408_v55 = vmul.f32 %v2262_v36, %v2088_v15  ;;  %v2091_v14 = vmax.f32 %v1945_v1, 0.0  ;;  %v1757_v4 = vpop.f32.mrf.mxu0  ;;  %v2564_v52 = vadd.f32 %v2563_v11, %v2407_v39  ;;  %v2272_v41 = vpop.permute.xlu0 %2271 }
 0x296   : > { %v1950_v8 = vpop.f32.mrf.mxu1  ;;  %v2090_v0 = vmax.f32 %v1754_v25, 0.0  ;;  %v1758_v26 = vadd.f32 %v1757_v4, %v4146_v57  ;;  %v2409_v29 = vmul.f32 %v2267_v30, %v2089_v17  ;;  %v2527_v35 = vadd.f32 %v2526_v51, %v2406_v42  ;;  %v2277_v2 = vpop.permute.xlu1 %2276 }
 0x297   : > { %v2092_v58 = vmax.f32 %v1947_v43, 0.0  ;;  %v1951_v23 = vadd.f32 %v1950_v8, %v4146_v57  ;;  %v1759_v48 = vpop.f32.mrf.mxu0  ;;  %v2411_v3 = vmul.f32 %v2267_v30, %v2091_v14  ;;  %v2601_v53 = vadd.f32 %v2600_v46, %v2408_v55 }
 0x298   : > { %v1952_v13 = vpop.f32.mrf.mxu1  ;;  %v2093_v37 = vmax.f32 %v1758_v26, 0.0  ;;  %v1760_v18 = vadd.f32 %v1759_v48, %v4146_v57  ;;  %v2410_v7 = vmul.f32 %v2267_v30, %v2090_v0  ;;  %v2491_v59 = vadd.f32 %v2490_v5, %v2409_v29 }
 0x299   : > { %v2095_v62 = vmax.f32 %v1951_v23, 0.0  ;;  %v1953_v16 = vadd.f32 %v1952_v13, %v4146_v57  ;;  %v1761_v20 = vpop.f32.mrf.mxu0  ;;  %v2412_v27 = vmul.f32 %v2267_v30, %v2092_v58  ;;  %v2565_v12 = vadd.f32 %v2564_v52, %v2411_v3 }
 0x29a   : > { %v1954_v36 = vpop.f32.mrf.mxu1  ;;  %v2413_v63 = vmul.f32 %v2272_v41, %v2093_v37  ;;  %v2094_v49 = vmax.f32 %v1760_v18, 0.0  ;;  %v1762_v40 = vadd.f32 %v1761_v20, %v4148_v54  ;;  %v2528_v42 = vadd.f32 %v2527_v35, %v2410_v7  ;;  %v2287_v20 = vpop.permute.xlu1 %2286 }
 0x29b   : > { %v2415_v31 = vmul.f32 %v2272_v41, %v2095_v62  ;;  %v2096_v50 = vmax.f32 %v1953_v16, 0.0  ;;  %v1955_v60 = vadd.f32 %v1954_v36, %v4148_v54  ;;  %v1763_v45 = vpop.f32.mrf.mxu0  ;;  %v2602_v55 = vadd.f32 %v2601_v53, %v2412_v27 }
 0x29c   : > { %v1956_v28 = vpop.f32.mrf.mxu1  ;;  %v1764_v6 = vadd.f32 %v1763_v45, %v4148_v54  ;;  %v2414_v39 = vmul.f32 %v2272_v41, %v2094_v49  ;;  %v2097_v15 = vmax.f32 %v1762_v40, 0.0  ;;  %v2492_v17 = vadd.f32 %v2491_v59, %v2413_v63 }
 0x29d   : > { %v1957_v57 = vadd.f32 %v1956_v28, %v4148_v54  ;;  %v2416_v56 = vmul.f32 %v2272_v41, %v2096_v50  ;;  %v2099_v44 = vmax.f32 %v1955_v60, 0.0  ;;  %v1767_v1 = vpop.f32.mrf.mxu0  ;;  %v2566_v14 = vadd.f32 %v2565_v12, %v2415_v31  ;;  %v2282_v54 = vpop.permute.xlu0 %2281 }
 0x29e   : > { %v1960_v22 = vpop.f32.mrf.mxu1  ;;  %v2098_v38 = vmax.f32 %v1764_v6, 0.0  ;;  %v1768_v25 = vadd.f32 %v1767_v1, %v4150_v21  ;;  %v2417_v30 = vmul.f32 %v2277_v2, %v2097_v15  ;;  %v2529_v23 = vadd.f32 %v2528_v42, %v2414_v39 }
 0x29f   : > { %v2100_v11 = vmax.f32 %v1957_v57, 0.0  ;;  %v1961_v43 = vadd.f32 %v1960_v22, %v4150_v21  ;;  %v1769_v4 = vpop.f32.mrf.mxu0  ;;  %v2419_v0 = vmul.f32 %v2277_v2, %v2099_v44  ;;  %v2603_v51 = vadd.f32 %v2602_v55, %v2416_v56 }
 0x2a0   : > { %v1962_v8 = vpop.f32.mrf.mxu1  ;;  %v2101_v58 = vmax.f32 %v1768_v25, 0.0  ;;  %v1770_v46 = vadd.f32 %v1769_v4, %v4150_v21  ;;  %v2418_v13 = vmul.f32 %v2277_v2, %v2098_v38  ;;  %v2493_v36 = vadd.f32 %v2492_v17, %v2417_v30 }
 0x2a1   : > { %v2103_v26 = vmax.f32 %v1961_v43, 0.0  ;;  %v1963_v5 = vadd.f32 %v1962_v8, %v4150_v21  ;;  %v1771_v52 = vpop.f32.mrf.mxu0  ;;  %v2420_v41 = vmul.f32 %v2277_v2, %v2100_v11  ;;  %v2567_v7 = vadd.f32 %v2566_v14, %v2419_v0  ;;  %v2292_v45 = vpop.permute.xlu0 %2291 }
 0x2a2   : > { %v1964_v48 = vpop.f32.mrf.mxu1  ;;  %v2421_v29 = vmul.f32 %v2282_v54, %v2101_v58  ;;  %v2102_v37 = vmax.f32 %v1770_v46, 0.0  ;;  %v1772_v35 = vadd.f32 %v1771_v52, %v4152_v24  ;;  %v2530_v57 = vadd.f32 %v2529_v23, %v2418_v13  ;;  %v2297_v14 = vpop.permute.xlu1 %2296 }
 0x2a3   : > { %v2423_v3 = vmul.f32 %v2282_v54, %v2103_v26  ;;  %v2104_v62 = vmax.f32 %v1963_v5, 0.0  ;;  %v1965_v53 = vadd.f32 %v1964_v48, %v4152_v24  ;;  %v1773_v18 = vpop.f32.mrf.mxu0  ;;  %v2604_v39 = vadd.f32 %v2603_v51, %v2420_v41 }
 0x2a4   : > { %v1966_v16 = vpop.f32.mrf.mxu1  ;;  %v1774_v27 = vadd.f32 %v1773_v18, %v4152_v24  ;;  %v2422_v63 = vmul.f32 %v2282_v54, %v2102_v37  ;;  %v2105_v49 = vmax.f32 %v1772_v35, 0.0  ;;  %v2494_v56 = vadd.f32 %v2493_v36, %v2421_v29 }
 0x2a5   : > { %v1967_v21 = vadd.f32 %v1966_v16, %v4152_v24  ;;  %v2424_v31 = vmul.f32 %v2282_v54, %v2104_v62  ;;  %v2107_v50 = vmax.f32 %v1965_v53, 0.0  ;;  %v1777_v40 = vpop.f32.mrf.mxu0  ;;  %v2568_v15 = vadd.f32 %v2567_v7, %v2423_v3  ;;  %v2302_v5 = vpop.permute.xlu0 %2301 }
 0x2a6   : > { %v1970_v60 = vpop.f32.mrf.mxu1  ;;  %v2106_v28 = vmax.f32 %v1774_v27, 0.0  ;;  %v1778_v12 = vadd.f32 %v1777_v40, %v4154_v10  ;;  %v2425_v24 = vmul.f32 %v2287_v20, %v2105_v49  ;;  %v2531_v11 = vadd.f32 %v2530_v57, %v2422_v63  ;;  %v2307_v49 = vpop.permute.xlu1 %2306 }
 0x2a7   : > { %v2108_v59 = vmax.f32 %v1967_v21, 0.0  ;;  %v1971_v6 = vadd.f32 %v1970_v60, %v4154_v10  ;;  %v1779_v44 = vpop.f32.mrf.mxu0  ;;  %v2427_v22 = vmul.f32 %v2287_v20, %v2107_v50  ;;  %v2605_v25 = vadd.f32 %v2604_v39, %v2424_v31 }
 0x2a8   : > { %v1972_v1 = vpop.f32.mrf.mxu1  ;;  %v2109_v2 = vmax.f32 %v1778_v12, 0.0  ;;  %v1780_v43 = vadd.f32 %v1779_v44, %v4154_v10  ;;  %v2426_v4 = vmul.f32 %v2287_v20, %v2106_v28  ;;  %v2495_v52 = vadd.f32 %v2494_v56, %v2425_v24 }
 0x2a9   : > { %v2111_v38 = vmax.f32 %v1971_v6, 0.0  ;;  %v1973_v42 = vadd.f32 %v1972_v1, %v4154_v10  ;;  %v1781_v55 = vpop.f32.mrf.mxu0  ;;  %v2428_v8 = vmul.f32 %v2287_v20, %v2108_v59  ;;  %v2569_v48 = vadd.f32 %v2568_v15, %v2427_v22  ;;  %v2312_v39 = vpop.permute.xlu0 %2311 }
 0x2aa   : > { %v1974_v17 = vpop.f32.mrf.mxu1  ;;  %v2429_v54 = vmul.f32 %v2292_v45, %v2109_v2  ;;  %v2110_v0 = vmax.f32 %v1780_v43, 0.0  ;;  %v1782_v26 = vadd.f32 %v1781_v55, %v4156_v47  ;;  %v2532_v36 = vadd.f32 %v2531_v11, %v2426_v4 }
 0x2ab   : > { %v2431_v30 = vmul.f32 %v2292_v45, %v2111_v38  ;;  %v2112_v58 = vmax.f32 %v1973_v42, 0.0  ;;  %v1975_v23 = vadd.f32 %v1974_v17, %v4156_v47  ;;  %v1783_v51 = vpop.f32.mrf.mxu0  ;;  %v2606_v7 = vadd.f32 %v2605_v25, %v2428_v8 }
 0x2ac   : > { %v1976_v46 = vpop.f32.mrf.mxu1  ;;  %v1784_v10 = vadd.f32 %v1783_v51, %v4156_v47  ;;  %v2430_v41 = vmul.f32 %v2292_v45, %v2110_v0  ;;  %v2113_v3 = vmax.f32 %v1782_v26, 0.0  ;;  %v2496_v27 = vadd.f32 %v2495_v52, %v2429_v54  ;;  %v4258_v0 = vpop.permute.xlu1 %2316 }
 0x2ad   : > { %v1977_v13 = vadd.f32 %v1976_v46, %v4156_v47  ;;  %v2432_v29 = vmul.f32 %v2292_v45, %v2112_v58  ;;  %v2115_v37 = vmax.f32 %v1975_v23, 0.0  ;;  %v1787_v62 = vpop.f32.mrf.mxu0  ;;  %v2570_v21 = vadd.f32 %v2569_v48, %v2431_v30 }
 0x2ae   : > { %v1980_v35 = vpop.f32.mrf.mxu1  ;;  %v2114_v53 = vmax.f32 %v1784_v10, 0.0  ;;  %v1788_v16 = vadd.f32 %v1787_v62, %v4158_v34  ;;  %v2433_v47 = vmul.f32 %v2297_v14, %v2113_v3  ;;  %v2533_v45 = vadd.f32 %v2532_v36, %v2430_v41  ;;  %v4262_v41 = vpop.permute.xlu0 %1465 }
 0x2af   : > { %v2116_v18 = vmax.f32 %v1977_v13, 0.0  ;;  %v1981_v20 = vadd.f32 %v1980_v35, %v4158_v34  ;;  %v1789_v63 = vpop.f32.mrf.mxu0  ;;  %v2435_v50 = vmul.f32 %v2297_v14, %v2115_v37  ;;  %v2607_v28 = vadd.f32 %v2606_v7, %v2432_v29 }
 0x2b0   : > { %v1982_v31 = vpop.f32.mrf.mxu1  ;;  %v2117_v40 = vmax.f32 %v1788_v16, 0.0  ;;  %v1790_v59 = vadd.f32 %v1789_v63, %v4158_v34  ;;  %v2434_v56 = vmul.f32 %v2297_v14, %v2114_v53  ;;  %v2497_v43 = vadd.f32 %v2496_v27, %v2433_v47 }
 0x2b1   : > { %v2119_v60 = vmax.f32 %v1981_v20, 0.0  ;;  %v1983_v12 = vadd.f32 %v1982_v31, %v4158_v34  ;;  %v1791_v6 = vpop.f32.mrf.mxu0  ;;  %v2436_v15 = vmul.f32 %v2297_v14, %v2116_v18  ;;  %v2571_v42 = vadd.f32 %v2570_v21, %v2435_v50 }
 0x2b2   : > { %v1984_v57 = vpop.f32.mrf.mxu1  ;;  %v2437_v44 = vmul.f32 %v2302_v5, %v2117_v40  ;;  %v2118_v24 = vmax.f32 %v1790_v59, 0.0  ;;  %v1792_v2 = vadd.f32 %v1791_v6, %v4160_v33  ;;  %v2534_v46 = vadd.f32 %v2533_v45, %v2434_v56  ;;  %v2322_v45 = vpop.permute.xlu1 %2321 }
 0x2b3   : > { %v2439_v1 = vmul.f32 %v2302_v5, %v2119_v60  ;;  %v2120_v22 = vmax.f32 %v1983_v12, 0.0  ;;  %v1985_v38 = vadd.f32 %v1984_v57, %v4160_v33  ;;  %v1793_v11 = vpop.f32.mrf.mxu0  ;;  %v2608_v52 = vadd.f32 %v2607_v28, %v2436_v15 }
 0x2b4   : > { %v1986_v25 = vpop.f32.mrf.mxu1  ;;  %v1794_v55 = vadd.f32 %v1793_v11, %v4160_v33  ;;  %v2438_v17 = vmul.f32 %v2302_v5, %v2118_v24  ;;  %v2121_v8 = vmax.f32 %v1792_v2, 0.0  ;;  %v2498_v48 = vadd.f32 %v2497_v43, %v2437_v44 }
 0x2b5   : > { %v1987_v34 = vadd.f32 %v1986_v25, %v4160_v33  ;;  %v2440_v4 = vmul.f32 %v2302_v5, %v2120_v22  ;;  %v2123_v14 = vmax.f32 %v1985_v38, 0.0  ;;  %v1797_v54 = vpop.f32.mrf.mxu0  ;;  %v2572_v10 = vadd.f32 %v2571_v42, %v2439_v1  ;;  %v4270_v1 = vpop.permute.xlu0 %1470 }
 0x2b6   : > { %v1990_v30 = vpop.f32.mrf.mxu1  ;;  %v2122_v58 = vmax.f32 %v1794_v55, 0.0  ;;  %v1798_v23 = vadd.f32 %v1797_v54, %v4162_v32  ;;  %v2441_v5 = vmul.f32 %v2307_v49, %v2121_v8  ;;  %v2535_v62 = vadd.f32 %v2534_v46, %v2438_v17 }
 0x2b7   : > { %v2124_v26 = vmax.f32 %v1987_v34, 0.0  ;;  %v1991_v51 = vadd.f32 %v1990_v30, %v4162_v32  ;;  %v1799_v13 = vpop.f32.mrf.mxu0  ;;  %v2443_v29 = vmul.f32 %v2307_v49, %v2123_v14  ;;  %v2609_v35 = vadd.f32 %v2608_v52, %v2440_v4 }
 0x2b8   : > { %v1992_v33 = vpop.f32.mrf.mxu1  ;;  %v2125_v3 = vmax.f32 %v1798_v23, 0.0  ;;  %v1800_v53 = vadd.f32 %v1799_v13, %v4162_v32  ;;  %v2442_v36 = vmul.f32 %v2307_v49, %v2122_v58  ;;  %v2499_v28 = vadd.f32 %v2498_v48, %v2441_v5  ;;  %v2327_v23 = vpop.permute.xlu1 %2326 }
 0x2b9   : > { %v2127_v37 = vmax.f32 %v1991_v51, 0.0  ;;  %v1993_v18 = vadd.f32 %v1992_v33, %v4162_v32  ;;  %v1801_v16 = vpop.f32.mrf.mxu0  ;;  %v2444_v7 = vmul.f32 %v2307_v49, %v2124_v26  ;;  %v2573_v59 = vadd.f32 %v2572_v10, %v2443_v29 }
 0x2ba   : > { %v1994_v20 = vpop.f32.mrf.mxu1  ;;  %v2445_v27 = vmul.f32 %v2312_v39, %v2125_v3  ;;  %v2126_v63 = vmax.f32 %v1800_v53, 0.0  ;;  %v1802_v47 = vadd.f32 %v1801_v16, %v4164_v9  ;;  %v2536_v11 = vadd.f32 %v2535_v62, %v2442_v36 }
 0x2bb   : > { %v2447_v21 = vmul.f32 %v2312_v39, %v2127_v37  ;;  %v2128_v31 = vmax.f32 %v1993_v18, 0.0  ;;  %v1995_v50 = vadd.f32 %v1994_v20, %v4164_v9  ;;  %v1803_v40 = vpop.f32.mrf.mxu0  ;;  %v2610_v25 = vadd.f32 %v2609_v35, %v2444_v7  ;;  %v4282_v37 = vpop.permute.xlu0 %1475 }
 0x2bc   : > { %v1996_v60 = vpop.f32.mrf.mxu1  ;;  %v1804_v12 = vadd.f32 %v1803_v40, %v4164_v9  ;;  %v2446_v6 = vmul.f32 %v2312_v39, %v2126_v63  ;;  %v2129_v49 = vmax.f32 %v1802_v47, 0.0  ;;  %v2500_v43 = vadd.f32 %v2499_v28, %v2445_v27 }
 0x2bd   : > { %v1997_v32 = vadd.f32 %v1996_v60, %v4164_v9  ;;  %v2448_v57 = vmul.f32 %v2312_v39, %v2128_v31  ;;  %v2131_v56 = vmax.f32 %v1995_v50, 0.0  ;;  %v1807_v15 = vpop.f32.mrf.mxu0  ;;  %v2574_v42 = vadd.f32 %v2573_v59, %v2447_v21 }
 0x2be   : > { %v2000_v44 = vpop.f32.mrf.mxu1  ;;  %v2130_v24 = vmax.f32 %v1804_v12, 0.0  ;;  %v1808_v2 = vadd.f32 %v1807_v15, %v4166_v61  ;;  %v2449_v39 = vmul.f32 %v4258_v0, %v2129_v49  ;;  %v2537_v8 = vadd.f32 %v2536_v11, %v2446_v6  ;;  %v2332_v12 = vpop.permute.xlu1 %2331 }
 0x2bf   : > { %v2132_v22 = vmax.f32 %v1997_v32, 0.0  ;;  %v2001_v38 = vadd.f32 %v2000_v44, %v4166_v61  ;;  %v1809_v55 = vpop.f32.mrf.mxu0  ;;  %v2451_v34 = vmul.f32 %v4258_v0, %v2131_v56  ;;  %v2611_v14 = vadd.f32 %v2610_v25, %v2448_v57 }
 0x2c0   : > { %v2002_v9 = vpop.f32.mrf.mxu1  ;;  %v2133_v17 = vmax.f32 %v1808_v2, 0.0  ;;  %v1810_v54 = vadd.f32 %v1809_v55, %v4166_v61  ;;  %v2450_v51 = vmul.f32 %v4258_v0, %v2130_v24 }
 0x2c1   : > { %v2135_v4 = vmax.f32 %v2001_v38, 0.0  ;;  %v2003_v30 = vadd.f32 %v2002_v9, %v4166_v61  ;;  %v1811_v58 = vpop.f32.mrf.mxu0  ;;  %v2452_v46 = vmul.f32 %v4258_v0, %v2132_v22  ;;  %v2501_v61 = vadd.f32 %v2500_v43, %v2449_v39  ;;  %v1481_v22 = vpop.permute.xlu0 %1480 }
 0x2c2   : > { %v2004_v26 = vpop.f32.mrf.mxu1  ;;  %v2453_v52 = vmul.f32 %v2322_v45, %v2133_v17  ;;  %v2134_v10 = vmax.f32 %v1810_v54, 0.0  ;;  %v1812_v33 = vadd.f32 %v1811_v58, %v4168_v19  ;;  %v2575_v62 = vadd.f32 %v2574_v42, %v2451_v34 }
 0x2c3   : > { %v2455_v48 = vmul.f32 %v2322_v45, %v2135_v4  ;;  %v2136_v13 = vmax.f32 %v2003_v30, 0.0  ;;  %v2005_v5 = vadd.f32 %v2004_v26, %v4168_v19  ;;  %v1813_v29 = vpop.f32.mrf.mxu0  ;;  %v2538_v47 = vadd.f32 %v2537_v8, %v2450_v51  ;;  %v2337_v51 = vpop.permute.xlu1 %2336 }
 0x2c4   : > { %v2006_v3 = vpop.f32.mrf.mxu1  ;;  %v1814_v35 = vadd.f32 %v1813_v29, %v4168_v19  ;;  %v2454_v18 = vmul.f32 %v2322_v45, %v2134_v10  ;;  %v2137_v16 = vmax.f32 %v1812_v33, 0.0  ;;  %v2612_v50 = vadd.f32 %v2611_v14, %v2452_v46 }
 0x2c5   : > { %v2007_v53 = vadd.f32 %v2006_v3, %v4168_v19  ;;  %v2456_v0 = vmul.f32 %v2322_v45, %v2136_v13  ;;  %v2139_v20 = vmax.f32 %v2005_v5, 0.0  ;;  %v1817_v36 = vpop.f32.mrf.mxu0  ;;  %v2502_v40 = vadd.f32 %v2501_v61, %v2453_v52 }
 0x2c6   : > { %v2010_v7 = vpop.f32.mrf.mxu1  ;;  %v2138_v27 = vmax.f32 %v1814_v35, 0.0  ;;  %v1818_v63 = vadd.f32 %v1817_v36, %v4262_v41  ;;  %v2576_v60 = vadd.f32 %v2575_v62, %v2455_v48  ;;  %v2457_v19 = vmul.f32 %v2327_v23, %v2137_v16 }
 0x2c7   : > { %v2140_v21 = vmax.f32 %v2007_v53, 0.0  ;;  %v2011_v31 = vadd.f32 %v2010_v7, %v4262_v41  ;;  %v1819_v28 = vpop.f32.mrf.mxu0  ;;  %v2459_v32 = vmul.f32 %v2327_v23, %v2139_v20  ;;  %v2539_v57 = vadd.f32 %v2538_v47, %v2454_v18 }
 0x2c8   : > { %v2012_v59 = vpop.f32.mrf.mxu1  ;;  %v2141_v45 = vmax.f32 %v1818_v63, 0.0  ;;  %v2613_v49 = vadd.f32 %v2612_v50, %v2456_v0  ;;  %v1820_v56 = vadd.f32 %v1819_v28, %v4262_v41  ;;  %v2458_v2 = vmul.f32 %v2327_v23, %v2138_v27 }
 0x2c9   : > { %v2143_v6 = vmax.f32 %v2011_v31, 0.0  ;;  %v2013_v15 = vadd.f32 %v2012_v59, %v4262_v41  ;;  %v1821_v44 = vpop.f32.mrf.mxu0  ;;  %v2460_v38 = vmul.f32 %v2327_v23, %v2140_v21  ;;  %v2503_v17 = vadd.f32 %v2502_v40, %v2457_v19 }
 0x2ca   : > { %v2014_v24 = vpop.f32.mrf.mxu1  ;;  %v2461_v11 = vmul.f32 %v2332_v12, %v2141_v45  ;;  %v2142_v43 = vmax.f32 %v1820_v56, 0.0  ;;  %v1822_v55 = vadd.f32 %v1821_v44, %v4270_v1  ;;  %v2577_v4 = vadd.f32 %v2576_v60, %v2459_v32 }
 0x2cb   : > { %v2463_v25 = vmul.f32 %v2332_v12, %v2143_v6  ;;  %v2144_v42 = vmax.f32 %v2013_v15, 0.0  ;;  %v2015_v9 = vadd.f32 %v2014_v24, %v4270_v1  ;;  %v1823_v39 = vpop.f32.mrf.mxu0  ;;  %v2540_v13 = vadd.f32 %v2539_v57, %v2458_v2  ;;  %v2347_v15 = vpop.permute.xlu1 %2346 }
 0x2cc   : > { %v2016_v34 = vpop.f32.mrf.mxu1  ;;  %v1824_v8 = vadd.f32 %v1823_v39, %v4270_v1  ;;  %v2462_v14 = vmul.f32 %v2332_v12, %v2142_v43  ;;  %v2145_v30 = vmax.f32 %v1822_v55, 0.0  ;;  %v2614_v33 = vadd.f32 %v2613_v49, %v2460_v38 }
 0x2cd   : > { %v2017_v41 = vadd.f32 %v2016_v34, %v4270_v1  ;;  %v2464_v54 = vmul.f32 %v2332_v12, %v2144_v42  ;;  %v2147_v58 = vmax.f32 %v2015_v9, 0.0  ;;  %v1827_v26 = vpop.f32.mrf.mxu0  ;;  %v2504_v5 = vadd.f32 %v2503_v17, %v2461_v11  ;;  %v2342_v1 = vpop.permute.xlu0 %2341 }
 0x2ce   : > { %v2020_v23 = vpop.f32.mrf.mxu1  ;;  %v2146_v46 = vmax.f32 %v1824_v8, 0.0  ;;  %v1828_v48 = vadd.f32 %v1827_v26, %v4282_v37  ;;  %v2578_v29 = vadd.f32 %v2577_v4, %v2463_v25  ;;  %v2465_v62 = vmul.f32 %v2337_v51, %v2145_v30 }
 0x2cf   : > { %v2148_v52 = vmax.f32 %v2017_v41, 0.0  ;;  %v2021_v10 = vadd.f32 %v2020_v23, %v4282_v37  ;;  %v1829_v3 = vpop.f32.mrf.mxu0  ;;  %v2467_v35 = vmul.f32 %v2337_v51, %v2147_v58  ;;  %v2541_v0 = vadd.f32 %v2540_v13, %v2462_v14 }
 0x2d0   : > { %v2022_v61 = vpop.f32.mrf.mxu1  ;;  %v2149_v53 = vmax.f32 %v1828_v48, 0.0  ;;  %v2615_v16 = vadd.f32 %v2614_v33, %v2464_v54  ;;  %v1830_v20 = vadd.f32 %v1829_v3, %v4282_v37  ;;  %v2466_v21 = vmul.f32 %v2337_v51, %v2146_v46 }
 0x2d1   : > { %v2151_v18 = vmax.f32 %v2021_v10, 0.0  ;;  %v2023_v36 = vadd.f32 %v2022_v61, %v4282_v37  ;;  %v1831_v7 = vpop.f32.mrf.mxu0  ;;  %v2468_v63 = vmul.f32 %v2337_v51, %v2148_v52  ;;  %v2505_v19 = vadd.f32 %v2504_v5, %v2465_v62 }
 0x2d2   : > { %v2024_v27 = vpop.f32.mrf.mxu1  ;;  %v2469_v31 = vmul.f32 %v2342_v1, %v2149_v53  ;;  %v2150_v50 = vmax.f32 %v1830_v20, 0.0  ;;  %v1832_v60 = vadd.f32 %v1831_v7, %v1481_v22  ;;  %v2579_v32 = vadd.f32 %v2578_v29, %v2467_v35 }
 0x2d3   : > { %v2471_v47 = vmul.f32 %v2342_v1, %v2151_v18  ;;  %v2152_v40 = vmax.f32 %v2023_v36, 0.0  ;;  %v2025_v28 = vadd.f32 %v2024_v27, %v1481_v22  ;;  %v1833_v59 = vpop.f32.mrf.mxu0  ;;  %v2542_v44 = vadd.f32 %v2541_v0, %v2466_v21  ;;  %v2629_v18 = vpop.permute.xlu0 %2628 }
 0x2d4   : > { %v2026_v12 = vpop.f32.mrf.mxu1  ;;  %v1834_v45 = vadd.f32 %v1833_v59, %v1481_v22  ;;  %v2470_v57 = vmul.f32 %v2342_v1, %v2150_v50  ;;  %v2153_v56 = vmax.f32 %v1832_v60, 0.0  ;;  %v2616_v24 = vadd.f32 %v2615_v16, %v2468_v63 }
 0x2d5   : > { %v2027_v6 = vadd.f32 %v2026_v12, %v1481_v22  ;;  %v2472_v49 = vmul.f32 %v2342_v1, %v2152_v40  ;;  %v2155_v37 = vmax.f32 %v2025_v28, 0.0  ;;  %v2506_v11 = vadd.f32 %v2505_v19, %v2469_v31 }
 0x2d6   : > { %v2154_v2 = vmax.f32 %v1834_v45, 0.0  ;;  %v2580_v25 = vadd.f32 %v2579_v32, %v2471_v47  ;;  %v2473_v43 = vmul.f32 %v2347_v15, %v2153_v56  ;;  %v2543_v55 = vadd.f32 %v2542_v44, %v2470_v57 }
 0x2d7   : > { %v2156_v38 = vmax.f32 %v2027_v6, 0.0  ;;  %v2475_v42 = vmul.f32 %v2347_v15, %v2155_v37  ;;  %v2617_v9 = vadd.f32 %v2616_v24, %v2472_v49  ;;  %v2631_v22 = vlaneseq }
 0x2d8   : > { %v2474_v39 = vmul.f32 %v2347_v15, %v2154_v2  ;;  %v2507_v17 = vadd.f32 %v2506_v11, %v2473_v43  ;;  %v3019_v48 = vmov 1966171168  }
 0x2d9   : > { %v2476_v34 = vmul.f32 %v2347_v15, %v2156_v38  ;;  %v2581_v4 = vadd.f32 %v2580_v25, %v2475_v42  ;;  %v2632_v51 = vshrl.u32 %v2631_v22, 7  ;;  %v2646_v10 = vunpack.c.l.s4 %v3019_v48 }
 0x2da   : > { %v2544_v8 = vadd.f32 %v2543_v55, %v2474_v39  ;;  %v2508_v14 = vrot.slane %v2507_v17, 4  ;;  %vm2670_vm1 = vcmp.lt.s32.totalorder %v2631_v22, 512 }
 0x2db   : > { %v2618_v41 = vadd.f32 %v2617_v9, %v2476_v34  ;;  %v2582_v54 = vrot.slane %v2581_v4, 4  ;;  %v2633_v1 = vsub.s32 0, %v2632_v51  ;;  %v2647_v53 = vunpack.c.0.s8 %v2646_v10 }
 0x2dc   : > { %v2545_v30 = vrot.slane %v2544_v8, 4  ;;  %v2509_v26 = vadd.f32 %v2508_v14, %v2507_v17 }
 0x2dd   : > { %v2619_v58 = vrot.slane %v2618_v41, 4  ;;  %v2583_v23 = vadd.f32 %v2582_v54, %v2581_v4  ;;  %v2634_v21 = vrot.slane %v2629_v18, %v2633_v1  ;;  %v2650_v47 = vsub.s32 %v2647_v53, %v2632_v51 }
 0x2de   : > { %v2546_v46 = vadd.f32 %v2545_v30, %v2544_v8  ;;  %v2510_v13 = vrot.slane %v2509_v26, 2 }
 0x2df   : > { %v2620_v52 = vadd.f32 %v2619_v58, %v2618_v41  ;;  %v2584_v33 = vrot.slane %v2583_v23, 2 }
 0x2e0   : > { %v2547_v5 = vrot.slane %v2546_v46, 2  ;;  %v2511_v3 = vadd.f32 %v2510_v13, %v2509_v26 }
 0x2e1   : > { %v2621_v29 = vrot.slane %v2620_v52, 2  ;;  %v2585_v61 = vadd.f32 %v2584_v33, %v2583_v23 }
 0x2e2   : > { %v2548_v62 = vadd.f32 %v2547_v5, %v2546_v46  ;;  %v2512_v0 = vrot.slane %v2511_v3, 1 }
 0x2e3   : > { %v2622_v35 = vadd.f32 %v2621_v29, %v2620_v52  ;;  %v2586_v16 = vrot.slane %v2585_v61, 1 }
 0x2e4   : > { %v2549_v20 = vrot.slane %v2548_v62, 1  ;;  %v2513_v7 = vadd.f32 %v2512_v0, %v2511_v3 }
 0x2e5   : > { %v2623_v36 = vrot.slane %v2622_v35, 1  ;;  %v2587_v27 = vadd.f32 %v2586_v16, %v2585_v61 }
 0x2e6   : > { %v2550_v63 = vadd.f32 %v2549_v20, %v2548_v62  ;;  %v2635_v50 = vadd.f32 %v2634_v21, %v2513_v7 }
 0x2e7   : > { %v2624_v31 = vadd.f32 %v2623_v36, %v2622_v35  ;;  %v2637_v40 = vadd.f32 %v2634_v21, %v2587_v27 }
 0x2e8   : > { %v2636_v60 = vadd.f32 %v2634_v21, %v2550_v63 }
 0x2e9   : > { %v2638_v28 = vadd.f32 %v2634_v21, %v2624_v31 }
 0x2ea   : > { %v2643_v59 = vcombine.low %v2635_v50, %v2636_v60 }
 0x2eb   : > { %v2644_v12 = vcombine.low %v2637_v40, %v2638_v28 }
 0x2ec   : > { %v2651_v19 = vrot.slane %v2643_v59, %v2650_v47 }
 0x2ed   : > { %v2658_v32 = vrot.slane %v2644_v12, %v2650_v47 }
 0x2ef   : > { %v2659_v45 = vcombine.low %v2651_v19, %v2658_v32 }
 0x2f1   : > { %v2666_v6 = vrot.slane %v2659_v45, %v2650_v47 }
 0x2f3   : > { %2672 = vst.msk [vmem:[%s312_s19] sm:$0xf] %vm2670_vm1, %v2666_v6 }
 0x2f4   : > { %2969 = shalt.err (!%p2966_p5)
}
 0x2f5   : > { %s2970_s14 = scalar_lea.hbm %s2686_s23, 64  ;;  %s2974_s16 = scalar_lea.hbm %s4342_s7, 128 }
 0x2f6   : > { %p2971_p7 = scmp.ne.s32.totalorder %s2686_s23, %s2970_s14  ;;  %p2975_p12 = scmp.lt.s32.totalorder %s2686_s23, %s4342_s7 }
 0x2f7   : > { %p2976_p13 = scmp.lt.s32.totalorder %s2974_s16, %s2970_s14 }
 0x2f8   : > { %p2972_p10 = pnand %p2971_p7, %p3102_p6 }
 0x2f9   : > { %p2977_p0 = por %p2976_p13, %p2975_p12 }
 0x2fa   : > { %p2973_p11 = pneg %p2972_p10 }
 0x2fc   : > { %p2978_p9 = pnand %p2977_p0, %p2973_p11 }
 0x2fe   : > { %2981 = shalt.err (!%p2978_p9)
}
 0x2ff   : > { %2849 = dma.vmem_to_hbm [thread:$0]  (%p3102_p6), %s2689_s20, 64, %s2686_s23, %s2674_s24  }
 0x300 PF: > { %s2700_s19 = sand.u32 1, %s3004_s26   ;;  %p4485_p1 = scmp.ge.s32.totalorder %s3016_s29, 2 }
 0x301   : > { %s2701_s21 = scalar_lea.sflag [#allocation5], %s2700_s19 }
 0x302   : > { %p2852_p2 = pnand %p4485_p1, %p3106_p8 }
 0x304   : > { %p2853_p3 = pneg %p2852_p2 }
 0x306   : > { %2999 = dma.done.wait (%p2853_p3), %s2701_s21, 64  }
 0x307   : > { %3001 = vsyncadd (%p2853_p3), %s2701_s21, 4294967232  ;;  %p19_p9 = scmp.ge.s32.totalorder %s3087_s8, 4   ;;  %s4486_s26 = smov %s3008_s27 }
 0x308   : > { %s4487_s27 = smov %s3012_s28  ;;  %s4488_s28 = smov %s3100_s11 }
 0x309   : > { %s4489_s29 = smov %s3087_s8  ;;  %21 = sbr.rel (!%p19_p9) target bundleno = 6 (0x6), region = 111 }
 0x30e   :  { %2706 = vsyncpa [#allocation5], 1 }
 0x30f   :  { %2708 = vsyncpa [#allocation5 + $0x1], 1 }

</bundles_post_ra>
